<compile_context>
chip_gen: v7x
topology: tpu7x:2x2x1
jax: 0.10.0
libtpu: 0.0.40
codegen_flags: <defaults>
</compile_context>

<pallas_src>
import jax
import jax.numpy as jnp
from jax.experimental import pallas as pl
from jax.experimental.pallas import tpu as pltpu

LN_EPS = 1e-12          # config.layer_norm_eps (BERT default)
_SQRT_HALF = 0.7071067811865476
_MiB = 1024 * 1024


def _round_up(x, m):
    return ((x + m - 1) // m) * m


def _gelu_exact(x):
    # torch F.gelu default: exact erf-based GELU.
    return 0.5 * x * (1.0 + jax.lax.erf(x * _SQRT_HALF))


def _layernorm(x, gamma, beta):
    mean = jnp.mean(x, axis=-1, keepdims=True)
    var = jnp.mean(jnp.square(x - mean), axis=-1, keepdims=True)
    return (x - mean) * jax.lax.rsqrt(var + LN_EPS) * gamma + beta


def retrieval_head_kernel(labels_ref, feat_ref, posb_ref,
                          w1f_ref, g1_ref, be1_ref,
                          w2_ref, b2_ref, g2_ref, be2_ref,
                          wp_ref, bp_ref, gp_ref, bep_ref,
                          wd_ref, bd_ref,
                          out_ref, h_ref):
    # ---- hidden trunk: compute once per row tile (first vocab tile only) ----
    @pl.when(pl.program_id(1) == 0)
    def _():
        tile_r = feat_ref.shape[0]
        n_inst = posb_ref.shape[0]

        labels = labels_ref[...]                                    # (T, 1) i32
        labels = jnp.where(labels == -100, 0, labels)               # torch clamp
        labels = jnp.clip(labels, 0, n_inst - 1)                    # gather clamp
        onehot = (jax.lax.broadcasted_iota(jnp.int32, (tile_r, n_inst), 1)
                  == labels).astype(posb_ref.dtype)                 # (T, N) bf16
        pos_bias = jnp.dot(onehot, posb_ref[...],
                           preferred_element_type=jnp.float32)      # (T, H) f32

        # dense_1 (feature half) + folded positional half + gelu + LN1
        h = jnp.dot(feat_ref[...].astype(w1f_ref.dtype), w1f_ref[...],
                    preferred_element_type=jnp.float32) + pos_bias
        h = _layernorm(_gelu_exact(h), g1_ref[...], be1_ref[...])

        # dense_2 + gelu + LN2
        h = jnp.dot(h.astype(w2_ref.dtype), w2_ref[...],
                    preferred_element_type=jnp.float32) + b2_ref[...]
        h = _layernorm(_gelu_exact(h), g2_ref[...], be2_ref[...])

        # pre_decoder + gelu + pre_decoder LayerNorm
        h = jnp.dot(h.astype(wp_ref.dtype), wp_ref[...],
                    preferred_element_type=jnp.float32) + bp_ref[...]
        h = _layernorm(_gelu_exact(h), gp_ref[...], bep_ref[...])

        h_ref[...] = h.astype(h_ref.dtype)          # cache trunk in bf16

    # ---- decoder: (T, H) @ (H, TILE_V) for the current vocab tile ----
    logits = jnp.dot(h_ref[...], wd_ref[...],
                     preferred_element_type=jnp.float32) + bd_ref[...]
    out_ref[...] = logits.astype(out_ref.dtype)


def prepare_params(params, pos_emb, *, tile_vocab=1024,
                   compute_dtype=jnp.bfloat16):
    """One-time parameter prep (hoisted out of the per-forward path):
    fold dense_1's positional half + bias into a per-instance (N, H) table,
    pre-cast matmul weights to compute_dtype, and pad decoder weight/bias
    along vocab to a lane-aligned multiple of tile_vocab."""
    (w1, b1, g1, be1, w2, b2, g2, be2, wp, bp, gp, bep, wd, bd) = params
    N, H = pos_emb.shape
    assert w1.shape == (2 * H, H)
    V = wd.shape[1]

    tile_vocab = min(tile_vocab, _round_up(V, 128))
    Vp = _round_up(V, tile_vocab)

    # positional half of dense_1 (+ its bias) folded per instance.
    posb = (pos_emb.astype(jnp.float32) @ w1[:H].astype(jnp.float32)
            + b1.astype(jnp.float32).reshape(1, H))                   # (N, H)

    wd_p = jnp.pad(wd.astype(jnp.float32), ((0, 0), (0, Vp - V)))
    bd_p = jnp.pad(bd.astype(jnp.float32).reshape(1, V), ((0, 0), (0, Vp - V)))

    cd = lambda a: a.astype(compute_dtype)
    f32 = lambda a: a.astype(jnp.float32).reshape(1, -1)

    tensors = (cd(posb),
               cd(w1[H:]), f32(g1), f32(be1),
               cd(w2), f32(b2), f32(g2), f32(be2),
               cd(wp), f32(bp), f32(gp), f32(bep),
               cd(wd_p), f32(bd_p))
    meta = dict(H=H, N=N, V=V, Vp=Vp, tile_vocab=tile_vocab,
                compute_dtype=compute_dtype)
    return tensors, meta


def _default_row_tiling():
    """(tile_rows, vmem_limit_bytes) per TPU generation."""
    try:
        kind = jax.devices()[0].device_kind.lower()
    except Exception:
        kind = ""
    # v4 / v5e / v5p / v6e: 128 MiB physical VMEM -> spend it on row tiles
    # (decoder-weight HBM traffic per output element scales as 2H/tile_rows).
    if any(tag in kind for tag in ("v4", "v5", "v6", "trillium")):
        return 2048, 96 * _MiB
    # v7x (64 MiB physical) / unknown: conservative.
    return 1024, 48 * _MiB


def retrieval_head_forward(features, instance_labels, prepared, *,
                           tile_rows=None, vmem_limit_bytes=None,
                           out_dtype=jnp.bfloat16,
                           single_buffer_invariants=True):
    """features: (B, S, H); instance_labels: (B, S) int.
    `prepared` is the output of prepare_params().  Returns logits (B, S, V)
    in `out_dtype` (bf16 by default; f32 accumulation inside the kernel)."""
    tensors, meta = prepared
    H, N, V, Vp = meta["H"], meta["N"], meta["V"], meta["Vp"]
    tile_vocab = meta["tile_vocab"]
    compute_dtype = meta["compute_dtype"]

    B, S, Hf = features.shape
    assert Hf == H
    R = B * S

    d_rows, d_vmem = _default_row_tiling()
    tile_rows = tile_rows or d_rows
    vmem_limit_bytes = vmem_limit_bytes or d_vmem

    tile_rows = min(tile_rows, _round_up(R, 8))
    # Prefer >= 2 row tiles on big inputs so the "parallel" row axis can be
    # sharded across both TensorCores (v7x megacore).
    if tile_rows >= R and R >= 1024:
        tile_rows = _round_up(pl.cdiv(R, 2), 8)
    Rp = _round_up(R, tile_rows)

    feat = features.reshape(R, H)                   # keep f32; cast per-dot in-kernel
    labels = instance_labels.reshape(R, 1).astype(jnp.int32)
    if Rp != R:
        feat = jnp.pad(feat, ((0, Rp - R), (0, 0)))
        labels = jnp.pad(labels, ((0, Rp - R), (0, 0)))   # instance 0 is valid

    grid = (Rp // tile_rows, Vp // tile_vocab)

    w_bytes = jnp.dtype(compute_dtype).itemsize
    out_bytes = jnp.dtype(out_dtype).itemsize
    cost = pl.CostEstimate(
        flops=int(2 * Rp * (3 * H * H + H * Vp + N * H)),
        transcendentals=int(3 * Rp * H),
        bytes_accessed=int(Rp * H * feat.dtype.itemsize + Rp * 4
                           + Rp * Vp * out_bytes
                           + grid[0] * (H + 1) * Vp * w_bytes
                           + (3 * H * H + N * H) * w_bytes + 9 * H * 4))

    def build_call(single_buffer):
        inv_kwargs = {}
        if single_buffer:
            # Grid-invariant operands: their DMAs are already skipped (constant
            # index_map); don't waste VMEM double-buffering them either.
            inv_kwargs = dict(pipeline_mode=pl.Buffered(1))
        full = lambda shape: pl.BlockSpec(shape, lambda r, v: (0, 0), **inv_kwargs)
        return pl.pallas_call(
            retrieval_head_kernel,
            out_shape=jax.ShapeDtypeStruct((Rp, Vp), out_dtype),
            grid=grid,
            in_specs=[
                pl.BlockSpec((tile_rows, 1), lambda r, v: (r, 0)),   # labels (reused over v)
                pl.BlockSpec((tile_rows, H), lambda r, v: (r, 0)),   # features (reused over v)
                full((N, H)),                                        # folded pos rows (bf16)
                full((H, H)),                                        # W1[H:] (bf16)
                full((1, H)), full((1, H)),                          # LN1 gamma/beta
                full((H, H)), full((1, H)),                          # dense_2 W / b
                full((1, H)), full((1, H)),                          # LN2 gamma/beta
                full((H, H)), full((1, H)),                          # pre_decoder W / b
                full((1, H)), full((1, H)),                          # pre_decoder LN gamma/beta
                pl.BlockSpec((H, tile_vocab), lambda r, v: (0, v)),  # decoder W tile
                pl.BlockSpec((1, tile_vocab), lambda r, v: (0, v)),  # decoder b tile
            ],
            out_specs=pl.BlockSpec((tile_rows, tile_vocab), lambda r, v: (r, v)),
            scratch_shapes=[pltpu.VMEM((tile_rows, H), compute_dtype)],
            compiler_params=pltpu.CompilerParams(
                dimension_semantics=("parallel", "arbitrary"),
                vmem_limit_bytes=int(vmem_limit_bytes)),
            cost_estimate=cost,
        )

    args = (labels, feat) + tensors
    if single_buffer_invariants:
        try:
            out = build_call(True)(*args)
        except Exception:
            # pipeline_mode=Buffered(1) not supported by this jax/Mosaic build.
            out = build_call(False)(*args)
    else:
        out = build_call(False)(*args)

    return out[:R, :V].reshape(B, S, V)


def reference_forward(features, instance_labels, pos_emb, params):
    """Pure-JAX f32 reference mirroring the PyTorch module (mlm_mask=None)."""
    (w1, b1, g1, be1, w2, b2, g2, be2, wp, bp, gp, bep, wd, bd) = params
    labels = jnp.where(instance_labels == -100, 0, instance_labels)
    pos = pos_emb[labels]                                   # (B, S, H)
    x = jnp.concatenate([pos, features], axis=-1)           # (B, S, 2H)
    hp = jax.lax.Precision.HIGHEST
    h = _layernorm(_gelu_exact(jnp.dot(x, w1, precision=hp) + b1[0]), g1[0], be1[0])
    h = _layernorm(_gelu_exact(jnp.dot(h, w2, precision=hp) + b2[0]), g2[0], be2[0])
    h = _layernorm(_gelu_exact(jnp.dot(h, wp, precision=hp) + bp[0]), gp[0], bep[0])
    return jnp.dot(h, wd, precision=hp) + bd[0]


def init_params(key, hidden, vocab):
    ks = jax.random.split(key, 14)
    lin = lambda k, din, dout: jax.random.normal(k, (din, dout), jnp.float32) * 0.02
    vec = lambda k, d, s: jax.random.normal(k, (1, d), jnp.float32) * s
    w1 = lin(ks[0], 2 * hidden, hidden); b1 = vec(ks[1], hidden, 0.02)
    g1 = 1.0 + vec(ks[2], hidden, 0.1);  be1 = vec(ks[3], hidden, 0.1)
    w2 = lin(ks[4], hidden, hidden);     b2 = vec(ks[5], hidden, 0.02)
    g2 = 1.0 + vec(ks[6], hidden, 0.1);  be2 = vec(ks[7], hidden, 0.1)
    wp = lin(ks[8], hidden, hidden);     bp = vec(ks[9], hidden, 0.02)
    gp = 1.0 + vec(ks[10], hidden, 0.1); bep = vec(ks[11], hidden, 0.1)
    wd = lin(ks[12], hidden, vocab);     bd = vec(ks[13], vocab, 0.02)
    return (w1, b1, g1, be1, w2, b2, g2, be2, wp, bp, gp, bep, wd, bd)


if __name__ == "__main__":
    batch, seqlen, hidden, num_instances, vocab = 2, 8, 32, 4, 128

    key = jax.random.PRNGKey(0)
    k_feat, k_pos, k_lab, k_par = jax.random.split(key, 4)

    features = jax.random.normal(k_feat, (batch, seqlen, hidden), jnp.float32)
    pos_emb = jax.random.normal(k_pos, (num_instances, hidden), jnp.float32) * 0.02
    instance_labels = jax.random.randint(k_lab, (batch, seqlen), 0, num_instances)
    instance_labels = instance_labels.at[0, 0].set(-100)   # exercise -100 -> 0 clamp
    params = init_params(k_par, hidden, vocab)

    prepared = prepare_params(params, pos_emb)              # one-time weight prep
    out = retrieval_head_forward(features, instance_labels, prepared)
    out = jax.block_until_ready(out)

    ref = reference_forward(features, instance_labels, pos_emb, params)
    assert out.shape == (batch, seqlen, vocab)
    out_f32 = out.astype(jnp.float32)
    # bf16 matmul operands / bf16 logits (f32 accumulation) vs the f32
    # reference: errors are O(1e-3) on O(0.1) logits at these shapes.
    assert jnp.allclose(out_f32, ref, atol=2e-2, rtol=2e-2), \
        float(jnp.max(jnp.abs(out_f32 - ref)))

    print("KERNEL_OK")
</pallas_src>

<mosaic_0001>
module attributes {stable_mosaic.version = 11 : i64} {
  func.func @retrieval_head_kernel(%arg0: i32, %arg1: i32, %arg2: memref<16x1xi32, #tpu.memory_space<vmem>>, %arg3: memref<16x32xf32, #tpu.memory_space<vmem>>, %arg4: memref<4x32xbf16, #tpu.memory_space<vmem>>, %arg5: memref<32x32xbf16, #tpu.memory_space<vmem>>, %arg6: memref<1x32xf32, #tpu.memory_space<vmem>>, %arg7: memref<1x32xf32, #tpu.memory_space<vmem>>, %arg8: memref<32x32xbf16, #tpu.memory_space<vmem>>, %arg9: memref<1x32xf32, #tpu.memory_space<vmem>>, %arg10: memref<1x32xf32, #tpu.memory_space<vmem>>, %arg11: memref<1x32xf32, #tpu.memory_space<vmem>>, %arg12: memref<32x32xbf16, #tpu.memory_space<vmem>>, %arg13: memref<1x32xf32, #tpu.memory_space<vmem>>, %arg14: memref<1x32xf32, #tpu.memory_space<vmem>>, %arg15: memref<1x32xf32, #tpu.memory_space<vmem>>, %arg16: memref<32x128xbf16, #tpu.memory_space<vmem>>, %arg17: memref<1x128xf32, #tpu.memory_space<vmem>>, %arg18: memref<16x128xbf16, #tpu.memory_space<vmem>>, %arg19: memref<16x32xbf16, #tpu.memory_space<vmem>>) attributes {dimension_semantics = [#tpu.dimension_semantics<parallel>, #tpu.dimension_semantics<arbitrary>], iteration_bounds = array<i64: 1, 1>, scalar_prefetch = 0 : i64, scratch_operands = 1 : i64, tpu.core_type = #tpu.core_type<tc>, window_params = [{transform_indices = @transform_0, window_bounds = array<i64: 16, 1>}, {transform_indices = @transform_1, window_bounds = array<i64: 16, 32>}, {pipeline_mode = #tpu.pipeline_mode<synchronous>, transform_indices = @transform_2, window_bounds = array<i64: 4, 32>}, {pipeline_mode = #tpu.pipeline_mode<synchronous>, transform_indices = @transform_3, window_bounds = array<i64: 32, 32>}, {pipeline_mode = #tpu.pipeline_mode<synchronous>, transform_indices = @transform_4, window_bounds = array<i64: 1, 32>}, {pipeline_mode = #tpu.pipeline_mode<synchronous>, transform_indices = @transform_5, window_bounds = array<i64: 1, 32>}, {pipeline_mode = #tpu.pipeline_mode<synchronous>, transform_indices = @transform_6, window_bounds = array<i64: 32, 32>}, {pipeline_mode = #tpu.pipeline_mode<synchronous>, transform_indices = @transform_7, window_bounds = array<i64: 1, 32>}, {pipeline_mode = #tpu.pipeline_mode<synchronous>, transform_indices = @transform_8, window_bounds = array<i64: 1, 32>}, {pipeline_mode = #tpu.pipeline_mode<synchronous>, transform_indices = @transform_9, window_bounds = array<i64: 1, 32>}, {pipeline_mode = #tpu.pipeline_mode<synchronous>, transform_indices = @transform_10, window_bounds = array<i64: 32, 32>}, {pipeline_mode = #tpu.pipeline_mode<synchronous>, transform_indices = @transform_11, window_bounds = array<i64: 1, 32>}, {pipeline_mode = #tpu.pipeline_mode<synchronous>, transform_indices = @transform_12, window_bounds = array<i64: 1, 32>}, {pipeline_mode = #tpu.pipeline_mode<synchronous>, transform_indices = @transform_13, window_bounds = array<i64: 1, 32>}, {transform_indices = @transform_14, window_bounds = array<i64: 32, 128>}, {transform_indices = @transform_15, window_bounds = array<i64: 1, 128>}, {transform_indices = @transform_16, window_bounds = array<i64: 16, 128>}]} {
    %c0_i32 = arith.constant 0 : i32
    %0 = arith.cmpi eq, %arg1, %c0_i32 : i32
    %1 = arith.extui %0 : i1 to i32
    %c0_i32_0 = arith.constant 0 : i32
    %2 = arith.cmpi ne, %1, %c0_i32_0 : i32
    scf.if %2 {
      %c0_8 = arith.constant 0 : index
      %c0_9 = arith.constant 0 : index
      %11 = vector.load %arg2[%c0_8, %c0_9] : memref<16x1xi32, #tpu.memory_space<vmem>>, vector<16x1xi32>
      %c-100_i32 = arith.constant -100 : i32
      %12 = vector.broadcast %c-100_i32 : i32 to vector<16x1xi32>
      %13 = arith.cmpi eq, %11, %12 : vector<16x1xi32>
      %c0_i32_10 = arith.constant 0 : i32
      %14 = vector.broadcast %c0_i32_10 : i32 to vector<16x1xi32>
      %15 = arith.select %13, %14, %11 : vector<16x1xi1>, vector<16x1xi32>
      %c0_i32_11 = arith.constant 0 : i32
      %c3_i32 = arith.constant 3 : i32
      %16 = vector.broadcast %c0_i32_11 : i32 to vector<16x1xi32>
      %17 = arith.maxsi %16, %15 : vector<16x1xi32>
      %18 = vector.broadcast %c3_i32 : i32 to vector<16x1xi32>
      %19 = arith.minsi %18, %17 : vector<16x1xi32>
      %20 = tpu.iota {dimensions = array<i32: 1>} : vector<16x4xi32>
      %21 = vector.broadcast %19 : vector<16x1xi32> to vector<16x4xi32>
      %22 = arith.cmpi eq, %20, %21 : vector<16x4xi32>
      %23 = arith.extui %22 : vector<16x4xi1> to vector<16x4xi32>
      %24 = arith.sitofp %23 : vector<16x4xi32> to vector<16x4xf32>
      %25 = arith.truncf %24 : vector<16x4xf32> to vector<16x4xbf16>
      %c0_12 = arith.constant 0 : index
      %c0_13 = arith.constant 0 : index
      %26 = vector.load %arg4[%c0_12, %c0_13] : memref<4x32xbf16, #tpu.memory_space<vmem>>, vector<4x32xbf16>
      %cst_14 = arith.constant dense<0.000000e+00> : vector<16x32xf32>
      %27 = tpu.matmul %25, %26, %cst_14 {dimension_numbers = #tpu.dot_dimension_numbers<[1], [0], [0], [1], [0, 0, 1, 1], [], []>} : vector<16x4xbf16>, vector<4x32xbf16>, vector<16x32xf32> -> vector<16x32xf32>
      %c0_15 = arith.constant 0 : index
      %c0_16 = arith.constant 0 : index
      %28 = vector.load %arg3[%c0_15, %c0_16] : memref<16x32xf32, #tpu.memory_space<vmem>>, vector<16x32xf32>
      %29 = arith.truncf %28 : vector<16x32xf32> to vector<16x32xbf16>
      %c0_17 = arith.constant 0 : index
      %c0_18 = arith.constant 0 : index
      %30 = vector.load %arg5[%c0_17, %c0_18] : memref<32x32xbf16, #tpu.memory_space<vmem>>, vector<32x32xbf16>
      %cst_19 = arith.constant dense<0.000000e+00> : vector<16x32xf32>
      %31 = tpu.matmul %29, %30, %cst_19 {dimension_numbers = #tpu.dot_dimension_numbers<[1], [0], [0], [1], [0, 0, 1, 1], [], []>} : vector<16x32xbf16>, vector<32x32xbf16>, vector<16x32xf32> -> vector<16x32xf32>
      %32 = arith.addf %31, %27 : vector<16x32xf32>
      %cst_20 = arith.constant 5.000000e-01 : f32
      %33 = vector.broadcast %cst_20 : f32 to vector<16x32xf32>
      %34 = arith.mulf %33, %32 : vector<16x32xf32>
      %cst_21 = arith.constant 0.707106769 : f32
      %35 = vector.broadcast %cst_21 : f32 to vector<16x32xf32>
      %36 = arith.mulf %32, %35 : vector<16x32xf32>
      %37 = math.erf %36 : vector<16x32xf32>
      %cst_22 = arith.constant 1.000000e+00 : f32
      %38 = vector.broadcast %cst_22 : f32 to vector<16x32xf32>
      %39 = arith.addf %38, %37 : vector<16x32xf32>
      %40 = arith.mulf %34, %39 : vector<16x32xf32>
      %c0_23 = arith.constant 0 : index
      %c0_24 = arith.constant 0 : index
      %41 = vector.load %arg6[%c0_23, %c0_24] : memref<1x32xf32, #tpu.memory_space<vmem>>, vector<1x32xf32>
      %c0_25 = arith.constant 0 : index
      %c0_26 = arith.constant 0 : index
      %42 = vector.load %arg7[%c0_25, %c0_26] : memref<1x32xf32, #tpu.memory_space<vmem>>, vector<1x32xf32>
      %cst_27 = arith.constant dense<0.000000e+00> : vector<16xf32>
      %43 = vector.multi_reduction <add>, %40, %cst_27 [1] : vector<16x32xf32> to vector<16xf32>
      %44 = vector.shape_cast %43 : vector<16xf32> to vector<16x1xf32>
      %cst_28 = arith.constant 3.200000e+01 : f32
      %45 = vector.broadcast %cst_28 : f32 to vector<16x1xf32>
      %46 = arith.divf %44, %45 : vector<16x1xf32>
      %47 = vector.broadcast %46 : vector<16x1xf32> to vector<16x32xf32>
      %48 = arith.subf %40, %47 : vector<16x32xf32>
      %49 = arith.mulf %48, %48 : vector<16x32xf32>
      %cst_29 = arith.constant dense<0.000000e+00> : vector<16xf32>
      %50 = vector.multi_reduction <add>, %49, %cst_29 [1] : vector<16x32xf32> to vector<16xf32>
      %51 = vector.shape_cast %50 : vector<16xf32> to vector<16x1xf32>
      %cst_30 = arith.constant 3.200000e+01 : f32
      %52 = vector.broadcast %cst_30 : f32 to vector<16x1xf32>
      %53 = arith.divf %51, %52 : vector<16x1xf32>
      %54 = vector.broadcast %46 : vector<16x1xf32> to vector<16x32xf32>
      %55 = arith.subf %40, %54 : vector<16x32xf32>
      %cst_31 = arith.constant 9.99999996E-13 : f32
      %56 = vector.broadcast %cst_31 : f32 to vector<16x1xf32>
      %57 = arith.addf %53, %56 : vector<16x1xf32>
      %58 = math.rsqrt %57 : vector<16x1xf32>
      %59 = vector.broadcast %58 : vector<16x1xf32> to vector<16x32xf32>
      %60 = arith.mulf %55, %59 : vector<16x32xf32>
      %61 = vector.broadcast %41 : vector<1x32xf32> to vector<16x32xf32>
      %62 = arith.mulf %60, %61 : vector<16x32xf32>
      %63 = vector.broadcast %42 : vector<1x32xf32> to vector<16x32xf32>
      %64 = arith.addf %62, %63 : vector<16x32xf32>
      %65 = arith.truncf %64 : vector<16x32xf32> to vector<16x32xbf16>
      %c0_32 = arith.constant 0 : index
      %c0_33 = arith.constant 0 : index
      %66 = vector.load %arg8[%c0_32, %c0_33] : memref<32x32xbf16, #tpu.memory_space<vmem>>, vector<32x32xbf16>
      %cst_34 = arith.constant dense<0.000000e+00> : vector<16x32xf32>
      %67 = tpu.matmul %65, %66, %cst_34 {dimension_numbers = #tpu.dot_dimension_numbers<[1], [0], [0], [1], [0, 0, 1, 1], [], []>} : vector<16x32xbf16>, vector<32x32xbf16>, vector<16x32xf32> -> vector<16x32xf32>
      %c0_35 = arith.constant 0 : index
      %c0_36 = arith.constant 0 : index
      %68 = vector.load %arg9[%c0_35, %c0_36] : memref<1x32xf32, #tpu.memory_space<vmem>>, vector<1x32xf32>
      %69 = vector.broadcast %68 : vector<1x32xf32> to vector<16x32xf32>
      %70 = arith.addf %67, %69 : vector<16x32xf32>
      %cst_37 = arith.constant 5.000000e-01 : f32
      %71 = vector.broadcast %cst_37 : f32 to vector<16x32xf32>
      %72 = arith.mulf %71, %70 : vector<16x32xf32>
      %cst_38 = arith.constant 0.707106769 : f32
      %73 = vector.broadcast %cst_38 : f32 to vector<16x32xf32>
      %74 = arith.mulf %70, %73 : vector<16x32xf32>
      %75 = math.erf %74 : vector<16x32xf32>
      %cst_39 = arith.constant 1.000000e+00 : f32
      %76 = vector.broadcast %cst_39 : f32 to vector<16x32xf32>
      %77 = arith.addf %76, %75 : vector<16x32xf32>
      %78 = arith.mulf %72, %77 : vector<16x32xf32>
      %c0_40 = arith.constant 0 : index
      %c0_41 = arith.constant 0 : index
      %79 = vector.load %arg10[%c0_40, %c0_41] : memref<1x32xf32, #tpu.memory_space<vmem>>, vector<1x32xf32>
      %c0_42 = arith.constant 0 : index
      %c0_43 = arith.constant 0 : index
      %80 = vector.load %arg11[%c0_42, %c0_43] : memref<1x32xf32, #tpu.memory_space<vmem>>, vector<1x32xf32>
      %cst_44 = arith.constant dense<0.000000e+00> : vector<16xf32>
      %81 = vector.multi_reduction <add>, %78, %cst_44 [1] : vector<16x32xf32> to vector<16xf32>
      %82 = vector.shape_cast %81 : vector<16xf32> to vector<16x1xf32>
      %cst_45 = arith.constant 3.200000e+01 : f32
      %83 = vector.broadcast %cst_45 : f32 to vector<16x1xf32>
      %84 = arith.divf %82, %83 : vector<16x1xf32>
      %85 = vector.broadcast %84 : vector<16x1xf32> to vector<16x32xf32>
      %86 = arith.subf %78, %85 : vector<16x32xf32>
      %87 = arith.mulf %86, %86 : vector<16x32xf32>
      %cst_46 = arith.constant dense<0.000000e+00> : vector<16xf32>
      %88 = vector.multi_reduction <add>, %87, %cst_46 [1] : vector<16x32xf32> to vector<16xf32>
      %89 = vector.shape_cast %88 : vector<16xf32> to vector<16x1xf32>
      %cst_47 = arith.constant 3.200000e+01 : f32
      %90 = vector.broadcast %cst_47 : f32 to vector<16x1xf32>
      %91 = arith.divf %89, %90 : vector<16x1xf32>
      %92 = vector.broadcast %84 : vector<16x1xf32> to vector<16x32xf32>
      %93 = arith.subf %78, %92 : vector<16x32xf32>
      %cst_48 = arith.constant 9.99999996E-13 : f32
      %94 = vector.broadcast %cst_48 : f32 to vector<16x1xf32>
      %95 = arith.addf %91, %94 : vector<16x1xf32>
      %96 = math.rsqrt %95 : vector<16x1xf32>
      %97 = vector.broadcast %96 : vector<16x1xf32> to vector<16x32xf32>
      %98 = arith.mulf %93, %97 : vector<16x32xf32>
      %99 = vector.broadcast %79 : vector<1x32xf32> to vector<16x32xf32>
      %100 = arith.mulf %98, %99 : vector<16x32xf32>
      %101 = vector.broadcast %80 : vector<1x32xf32> to vector<16x32xf32>
      %102 = arith.addf %100, %101 : vector<16x32xf32>
      %103 = arith.truncf %102 : vector<16x32xf32> to vector<16x32xbf16>
      %c0_49 = arith.constant 0 : index
      %c0_50 = arith.constant 0 : index
      %104 = vector.load %arg12[%c0_49, %c0_50] : memref<32x32xbf16, #tpu.memory_space<vmem>>, vector<32x32xbf16>
      %cst_51 = arith.constant dense<0.000000e+00> : vector<16x32xf32>
      %105 = tpu.matmul %103, %104, %cst_51 {dimension_numbers = #tpu.dot_dimension_numbers<[1], [0], [0], [1], [0, 0, 1, 1], [], []>} : vector<16x32xbf16>, vector<32x32xbf16>, vector<16x32xf32> -> vector<16x32xf32>
      %c0_52 = arith.constant 0 : index
      %c0_53 = arith.constant 0 : index
      %106 = vector.load %arg13[%c0_52, %c0_53] : memref<1x32xf32, #tpu.memory_space<vmem>>, vector<1x32xf32>
      %107 = vector.broadcast %106 : vector<1x32xf32> to vector<16x32xf32>
      %108 = arith.addf %105, %107 : vector<16x32xf32>
      %cst_54 = arith.constant 5.000000e-01 : f32
      %109 = vector.broadcast %cst_54 : f32 to vector<16x32xf32>
      %110 = arith.mulf %109, %108 : vector<16x32xf32>
      %cst_55 = arith.constant 0.707106769 : f32
      %111 = vector.broadcast %cst_55 : f32 to vector<16x32xf32>
      %112 = arith.mulf %108, %111 : vector<16x32xf32>
      %113 = math.erf %112 : vector<16x32xf32>
      %cst_56 = arith.constant 1.000000e+00 : f32
      %114 = vector.broadcast %cst_56 : f32 to vector<16x32xf32>
      %115 = arith.addf %114, %113 : vector<16x32xf32>
      %116 = arith.mulf %110, %115 : vector<16x32xf32>
      %c0_57 = arith.constant 0 : index
      %c0_58 = arith.constant 0 : index
      %117 = vector.load %arg14[%c0_57, %c0_58] : memref<1x32xf32, #tpu.memory_space<vmem>>, vector<1x32xf32>
      %c0_59 = arith.constant 0 : index
      %c0_60 = arith.constant 0 : index
      %118 = vector.load %arg15[%c0_59, %c0_60] : memref<1x32xf32, #tpu.memory_space<vmem>>, vector<1x32xf32>
      %cst_61 = arith.constant dense<0.000000e+00> : vector<16xf32>
      %119 = vector.multi_reduction <add>, %116, %cst_61 [1] : vector<16x32xf32> to vector<16xf32>
      %120 = vector.shape_cast %119 : vector<16xf32> to vector<16x1xf32>
      %cst_62 = arith.constant 3.200000e+01 : f32
      %121 = vector.broadcast %cst_62 : f32 to vector<16x1xf32>
      %122 = arith.divf %120, %121 : vector<16x1xf32>
      %123 = vector.broadcast %122 : vector<16x1xf32> to vector<16x32xf32>
      %124 = arith.subf %116, %123 : vector<16x32xf32>
      %125 = arith.mulf %124, %124 : vector<16x32xf32>
      %cst_63 = arith.constant dense<0.000000e+00> : vector<16xf32>
      %126 = vector.multi_reduction <add>, %125, %cst_63 [1] : vector<16x32xf32> to vector<16xf32>
      %127 = vector.shape_cast %126 : vector<16xf32> to vector<16x1xf32>
      %cst_64 = arith.constant 3.200000e+01 : f32
      %128 = vector.broadcast %cst_64 : f32 to vector<16x1xf32>
      %129 = arith.divf %127, %128 : vector<16x1xf32>
      %130 = vector.broadcast %122 : vector<16x1xf32> to vector<16x32xf32>
      %131 = arith.subf %116, %130 : vector<16x32xf32>
      %cst_65 = arith.constant 9.99999996E-13 : f32
      %132 = vector.broadcast %cst_65 : f32 to vector<16x1xf32>
      %133 = arith.addf %129, %132 : vector<16x1xf32>
      %134 = math.rsqrt %133 : vector<16x1xf32>
      %135 = vector.broadcast %134 : vector<16x1xf32> to vector<16x32xf32>
      %136 = arith.mulf %131, %135 : vector<16x32xf32>
      %137 = vector.broadcast %117 : vector<1x32xf32> to vector<16x32xf32>
      %138 = arith.mulf %136, %137 : vector<16x32xf32>
      %139 = vector.broadcast %118 : vector<1x32xf32> to vector<16x32xf32>
      %140 = arith.addf %138, %139 : vector<16x32xf32>
      %141 = arith.truncf %140 : vector<16x32xf32> to vector<16x32xbf16>
      %c0_66 = arith.constant 0 : index
      %c0_67 = arith.constant 0 : index
      %142 = vector.load %arg19[%c0_66, %c0_67] : memref<16x32xbf16, #tpu.memory_space<vmem>>, vector<16x32xbf16>
      tpu.vector_store %arg19[%c0_66, %c0_67], %141 {strides = array<i32>} : memref<16x32xbf16, #tpu.memory_space<vmem>>, vector<16x32xbf16>,
    } else {
    }
    %c0 = arith.constant 0 : index
    %c0_1 = arith.constant 0 : index
    %3 = vector.load %arg19[%c0, %c0_1] : memref<16x32xbf16, #tpu.memory_space<vmem>>, vector<16x32xbf16>
    %c0_2 = arith.constant 0 : index
    %c0_3 = arith.constant 0 : index
    %4 = vector.load %arg16[%c0_2, %c0_3] : memref<32x128xbf16, #tpu.memory_space<vmem>>, vector<32x128xbf16>
    %cst = arith.constant dense<0.000000e+00> : vector<16x128xf32>
    %5 = tpu.matmul %3, %4, %cst {dimension_numbers = #tpu.dot_dimension_numbers<[1], [0], [0], [1], [0, 0, 1, 1], [], []>} : vector<16x32xbf16>, vector<32x128xbf16>, vector<16x128xf32> -> vector<16x128xf32>
    %c0_4 = arith.constant 0 : index
    %c0_5 = arith.constant 0 : index
    %6 = vector.load %arg17[%c0_4, %c0_5] : memref<1x128xf32, #tpu.memory_space<vmem>>, vector<1x128xf32>
    %7 = vector.broadcast %6 : vector<1x128xf32> to vector<16x128xf32>
    %8 = arith.addf %5, %7 : vector<16x128xf32>
    %9 = arith.truncf %8 : vector<16x128xf32> to vector<16x128xbf16>
    %c0_6 = arith.constant 0 : index
    %c0_7 = arith.constant 0 : index
    %10 = vector.load %arg18[%c0_6, %c0_7] : memref<16x128xbf16, #tpu.memory_space<vmem>>, vector<16x128xbf16>
    tpu.vector_store %arg18[%c0_6, %c0_7], %9 {strides = array<i32>} : memref<16x128xbf16, #tpu.memory_space<vmem>>, vector<16x128xbf16>,
    return
  }
  func.func @transform_0(%arg0: i32, %arg1: i32) -> (i32, i32) {
    %c0_i32 = arith.constant 0 : i32
    %c0_i32_0 = arith.constant 0 : i32
    return %arg0, %c0_i32 : i32, i32
  }
  func.func @transform_1(%arg0: i32, %arg1: i32) -> (i32, i32) {
    %c0_i32 = arith.constant 0 : i32
    %c0_i32_0 = arith.constant 0 : i32
    return %arg0, %c0_i32 : i32, i32
  }
  func.func @transform_2(%arg0: i32, %arg1: i32) -> (i32, i32) {
    %c0_i32 = arith.constant 0 : i32
    %c0_i32_0 = arith.constant 0 : i32
    %c0_i32_1 = arith.constant 0 : i32
    return %c0_i32, %c0_i32_0 : i32, i32
  }
  func.func @transform_3(%arg0: i32, %arg1: i32) -> (i32, i32) {
    %c0_i32 = arith.constant 0 : i32
    %c0_i32_0 = arith.constant 0 : i32
    %c0_i32_1 = arith.constant 0 : i32
    return %c0_i32, %c0_i32_0 : i32, i32
  }
  func.func @transform_4(%arg0: i32, %arg1: i32) -> (i32, i32) {
    %c0_i32 = arith.constant 0 : i32
    %c0_i32_0 = arith.constant 0 : i32
    %c0_i32_1 = arith.constant 0 : i32
    return %c0_i32, %c0_i32_0 : i32, i32
  }
  func.func @transform_5(%arg0: i32, %arg1: i32) -> (i32, i32) {
    %c0_i32 = arith.constant 0 : i32
    %c0_i32_0 = arith.constant 0 : i32
    %c0_i32_1 = arith.constant 0 : i32
    return %c0_i32, %c0_i32_0 : i32, i32
  }
  func.func @transform_6(%arg0: i32, %arg1: i32) -> (i32, i32) {
    %c0_i32 = arith.constant 0 : i32
    %c0_i32_0 = arith.constant 0 : i32
    %c0_i32_1 = arith.constant 0 : i32
    return %c0_i32, %c0_i32_0 : i32, i32
  }
  func.func @transform_7(%arg0: i32, %arg1: i32) -> (i32, i32) {
    %c0_i32 = arith.constant 0 : i32
    %c0_i32_0 = arith.constant 0 : i32
    %c0_i32_1 = arith.constant 0 : i32
    return %c0_i32, %c0_i32_0 : i32, i32
  }
  func.func @transform_8(%arg0: i32, %arg1: i32) -> (i32, i32) {
    %c0_i32 = arith.constant 0 : i32
    %c0_i32_0 = arith.constant 0 : i32
    %c0_i32_1 = arith.constant 0 : i32
    return %c0_i32, %c0_i32_0 : i32, i32
  }
  func.func @transform_9(%arg0: i32, %arg1: i32) -> (i32, i32) {
    %c0_i32 = arith.constant 0 : i32
    %c0_i32_0 = arith.constant 0 : i32
    %c0_i32_1 = arith.constant 0 : i32
    return %c0_i32, %c0_i32_0 : i32, i32
  }
  func.func @transform_10(%arg0: i32, %arg1: i32) -> (i32, i32) {
    %c0_i32 = arith.constant 0 : i32
    %c0_i32_0 = arith.constant 0 : i32
    %c0_i32_1 = arith.constant 0 : i32
    return %c0_i32, %c0_i32_0 : i32, i32
  }
  func.func @transform_11(%arg0: i32, %arg1: i32) -> (i32, i32) {
    %c0_i32 = arith.constant 0 : i32
    %c0_i32_0 = arith.constant 0 : i32
    %c0_i32_1 = arith.constant 0 : i32
    return %c0_i32, %c0_i32_0 : i32, i32
  }
  func.func @transform_12(%arg0: i32, %arg1: i32) -> (i32, i32) {
    %c0_i32 = arith.constant 0 : i32
    %c0_i32_0 = arith.constant 0 : i32
    %c0_i32_1 = arith.constant 0 : i32
    return %c0_i32, %c0_i32_0 : i32, i32
  }
  func.func @transform_13(%arg0: i32, %arg1: i32) -> (i32, i32) {
    %c0_i32 = arith.constant 0 : i32
    %c0_i32_0 = arith.constant 0 : i32
    %c0_i32_1 = arith.constant 0 : i32
    return %c0_i32, %c0_i32_0 : i32, i32
  }
  func.func @transform_14(%arg0: i32, %arg1: i32) -> (i32, i32) {
    %c0_i32 = arith.constant 0 : i32
    %c0_i32_0 = arith.constant 0 : i32
    return %c0_i32, %arg1 : i32, i32
  }
  func.func @transform_15(%arg0: i32, %arg1: i32) -> (i32, i32) {
    %c0_i32 = arith.constant 0 : i32
    %c0_i32_0 = arith.constant 0 : i32
    return %c0_i32, %arg1 : i32, i32
  }
  func.func @transform_16(%arg0: i32, %arg1: i32) -> (i32, i32) {
    %c0_i32 = arith.constant 0 : i32
    return %arg0, %arg1 : i32, i32
  }
}

module attributes {stable_mosaic.version = 11 : i64} {
  func.func @retrieval_head_kernel(%arg0: i32, %arg1: i32, %arg2: memref<16x1xi32, #tpu.memory_space<vmem>>, %arg3: memref<16x32xf32, #tpu.memory_space<vmem>>, %arg4: memref<4x32xbf16, #tpu.memory_space<vmem>>, %arg5: memref<32x32xbf16, #tpu.memory_space<vmem>>, %arg6: memref<1x32xf32, #tpu.memory_space<vmem>>, %arg7: memref<1x32xf32, #tpu.memory_space<vmem>>, %arg8: memref<32x32xbf16, #tpu.memory_space<vmem>>, %arg9: memref<1x32xf32, #tpu.memory_space<vmem>>, %arg10: memref<1x32xf32, #tpu.memory_space<vmem>>, %arg11: memref<1x32xf32, #tpu.memory_space<vmem>>, %arg12: memref<32x32xbf16, #tpu.memory_space<vmem>>, %arg13: memref<1x32xf32, #tpu.memory_space<vmem>>, %arg14: memref<1x32xf32, #tpu.memory_space<vmem>>, %arg15: memref<1x32xf32, #tpu.memory_space<vmem>>, %arg16: memref<32x128xbf16, #tpu.memory_space<vmem>>, %arg17: memref<1x128xf32, #tpu.memory_space<vmem>>, %arg18: memref<16x128xbf16, #tpu.memory_space<vmem>>, %arg19: memref<16x32xbf16, #tpu.memory_space<vmem>>) attributes {dimension_semantics = [#tpu.dimension_semantics<parallel>, #tpu.dimension_semantics<arbitrary>], iteration_bounds = array<i64: 1, 1>, scalar_prefetch = 0 : i64, scratch_operands = 1 : i64, tpu.core_type = #tpu.core_type<tc>, window_params = [{transform_indices = @transform_0, window_bounds = array<i64: 16, 1>}, {transform_indices = @transform_1, window_bounds = array<i64: 16, 32>}, {pipeline_mode = #tpu.pipeline_mode<synchronous>, transform_indices = @transform_2, window_bounds = array<i64: 4, 32>}, {pipeline_mode = #tpu.pipeline_mode<synchronous>, transform_indices = @transform_3, window_bounds = array<i64: 32, 32>}, {pipeline_mode = #tpu.pipeline_mode<synchronous>, transform_indices = @transform_4, window_bounds = array<i64: 1, 32>}, {pipeline_mode = #tpu.pipeline_mode<synchronous>, transform_indices = @transform_5, window_bounds = array<i64: 1, 32>}, {pipeline_mode = #tpu.pipeline_mode<synchronous>, transform_indices = @transform_6, window_bounds = array<i64: 32, 32>}, {pipeline_mode = #tpu.pipeline_mode<synchronous>, transform_indices = @transform_7, window_bounds = array<i64: 1, 32>}, {pipeline_mode = #tpu.pipeline_mode<synchronous>, transform_indices = @transform_8, window_bounds = array<i64: 1, 32>}, {pipeline_mode = #tpu.pipeline_mode<synchronous>, transform_indices = @transform_9, window_bounds = array<i64: 1, 32>}, {pipeline_mode = #tpu.pipeline_mode<synchronous>, transform_indices = @transform_10, window_bounds = array<i64: 32, 32>}, {pipeline_mode = #tpu.pipeline_mode<synchronous>, transform_indices = @transform_11, window_bounds = array<i64: 1, 32>}, {pipeline_mode = #tpu.pipeline_mode<synchronous>, transform_indices = @transform_12, window_bounds = array<i64: 1, 32>}, {pipeline_mode = #tpu.pipeline_mode<synchronous>, transform_indices = @transform_13, window_bounds = array<i64: 1, 32>}, {transform_indices = @transform_14, window_bounds = array<i64: 32, 128>}, {transform_indices = @transform_15, window_bounds = array<i64: 1, 128>}, {transform_indices = @transform_16, window_bounds = array<i64: 16, 128>}]} {
    %c0_i32 = arith.constant 0 : i32
    %0 = arith.cmpi eq, %arg1, %c0_i32 : i32
    %1 = arith.extui %0 : i1 to i32
    %c0_i32_0 = arith.constant 0 : i32
    %2 = arith.cmpi ne, %1, %c0_i32_0 : i32
    scf.if %2 {
      %c0_8 = arith.constant 0 : index
      %c0_9 = arith.constant 0 : index
      %11 = vector.load %arg2[%c0_8, %c0_9] : memref<16x1xi32, #tpu.memory_space<vmem>>, vector<16x1xi32>
      %c-100_i32 = arith.constant -100 : i32
      %12 = vector.broadcast %c-100_i32 : i32 to vector<16x1xi32>
      %13 = arith.cmpi eq, %11, %12 : vector<16x1xi32>
      %c0_i32_10 = arith.constant 0 : i32
      %14 = vector.broadcast %c0_i32_10 : i32 to vector<16x1xi32>
      %15 = arith.select %13, %14, %11 : vector<16x1xi1>, vector<16x1xi32>
      %c0_i32_11 = arith.constant 0 : i32
      %c3_i32 = arith.constant 3 : i32
      %16 = vector.broadcast %c0_i32_11 : i32 to vector<16x1xi32>
      %17 = arith.maxsi %16, %15 : vector<16x1xi32>
      %18 = vector.broadcast %c3_i32 : i32 to vector<16x1xi32>
      %19 = arith.minsi %18, %17 : vector<16x1xi32>
      %20 = tpu.iota {dimensions = array<i32: 1>} : vector<16x4xi32>
      %21 = vector.broadcast %19 : vector<16x1xi32> to vector<16x4xi32>
      %22 = arith.cmpi eq, %20, %21 : vector<16x4xi32>
      %23 = arith.extui %22 : vector<16x4xi1> to vector<16x4xi32>
      %24 = arith.sitofp %23 : vector<16x4xi32> to vector<16x4xf32>
      %25 = arith.truncf %24 : vector<16x4xf32> to vector<16x4xbf16>
      %c0_12 = arith.constant 0 : index
      %c0_13 = arith.constant 0 : index
      %26 = vector.load %arg4[%c0_12, %c0_13] : memref<4x32xbf16, #tpu.memory_space<vmem>>, vector<4x32xbf16>
      %cst_14 = arith.constant dense<0.000000e+00> : vector<16x32xf32>
      %27 = tpu.matmul %25, %26, %cst_14 {dimension_numbers = #tpu.dot_dimension_numbers<[1], [0], [0], [1], [0, 0, 1, 1], [], []>} : vector<16x4xbf16>, vector<4x32xbf16>, vector<16x32xf32> -> vector<16x32xf32>
      %c0_15 = arith.constant 0 : index
      %c0_16 = arith.constant 0 : index
      %28 = vector.load %arg3[%c0_15, %c0_16] : memref<16x32xf32, #tpu.memory_space<vmem>>, vector<16x32xf32>
      %29 = arith.truncf %28 : vector<16x32xf32> to vector<16x32xbf16>
      %c0_17 = arith.constant 0 : index
      %c0_18 = arith.constant 0 : index
      %30 = vector.load %arg5[%c0_17, %c0_18] : memref<32x32xbf16, #tpu.memory_space<vmem>>, vector<32x32xbf16>
      %cst_19 = arith.constant dense<0.000000e+00> : vector<16x32xf32>
      %31 = tpu.matmul %29, %30, %cst_19 {dimension_numbers = #tpu.dot_dimension_numbers<[1], [0], [0], [1], [0, 0, 1, 1], [], []>} : vector<16x32xbf16>, vector<32x32xbf16>, vector<16x32xf32> -> vector<16x32xf32>
      %32 = arith.addf %31, %27 : vector<16x32xf32>
      %cst_20 = arith.constant 5.000000e-01 : f32
      %33 = vector.broadcast %cst_20 : f32 to vector<16x32xf32>
      %34 = arith.mulf %33, %32 : vector<16x32xf32>
      %cst_21 = arith.constant 0.707106769 : f32
      %35 = vector.broadcast %cst_21 : f32 to vector<16x32xf32>
      %36 = arith.mulf %32, %35 : vector<16x32xf32>
      %37 = math.erf %36 : vector<16x32xf32>
      %cst_22 = arith.constant 1.000000e+00 : f32
      %38 = vector.broadcast %cst_22 : f32 to vector<16x32xf32>
      %39 = arith.addf %38, %37 : vector<16x32xf32>
      %40 = arith.mulf %34, %39 : vector<16x32xf32>
      %c0_23 = arith.constant 0 : index
      %c0_24 = arith.constant 0 : index
      %41 = vector.load %arg6[%c0_23, %c0_24] : memref<1x32xf32, #tpu.memory_space<vmem>>, vector<1x32xf32>
      %c0_25 = arith.constant 0 : index
      %c0_26 = arith.constant 0 : index
      %42 = vector.load %arg7[%c0_25, %c0_26] : memref<1x32xf32, #tpu.memory_space<vmem>>, vector<1x32xf32>
      %cst_27 = arith.constant dense<0.000000e+00> : vector<16xf32>
      %43 = vector.multi_reduction <add>, %40, %cst_27 [1] : vector<16x32xf32> to vector<16xf32>
      %44 = vector.shape_cast %43 : vector<16xf32> to vector<16x1xf32>
      %cst_28 = arith.constant 3.200000e+01 : f32
      %45 = vector.broadcast %cst_28 : f32 to vector<16x1xf32>
      %46 = arith.divf %44, %45 : vector<16x1xf32>
      %47 = vector.broadcast %46 : vector<16x1xf32> to vector<16x32xf32>
      %48 = arith.subf %40, %47 : vector<16x32xf32>
      %49 = arith.mulf %48, %48 : vector<16x32xf32>
      %cst_29 = arith.constant dense<0.000000e+00> : vector<16xf32>
      %50 = vector.multi_reduction <add>, %49, %cst_29 [1] : vector<16x32xf32> to vector<16xf32>
      %51 = vector.shape_cast %50 : vector<16xf32> to vector<16x1xf32>
      %cst_30 = arith.constant 3.200000e+01 : f32
      %52 = vector.broadcast %cst_30 : f32 to vector<16x1xf32>
      %53 = arith.divf %51, %52 : vector<16x1xf32>
      %54 = vector.broadcast %46 : vector<16x1xf32> to vector<16x32xf32>
      %55 = arith.subf %40, %54 : vector<16x32xf32>
      %cst_31 = arith.constant 9.99999996E-13 : f32
      %56 = vector.broadcast %cst_31 : f32 to vector<16x1xf32>
      %57 = arith.addf %53, %56 : vector<16x1xf32>
      %58 = math.rsqrt %57 : vector<16x1xf32>
      %59 = vector.broadcast %58 : vector<16x1xf32> to vector<16x32xf32>
      %60 = arith.mulf %55, %59 : vector<16x32xf32>
      %61 = vector.broadcast %41 : vector<1x32xf32> to vector<16x32xf32>
      %62 = arith.mulf %60, %61 : vector<16x32xf32>
      %63 = vector.broadcast %42 : vector<1x32xf32> to vector<16x32xf32>
      %64 = arith.addf %62, %63 : vector<16x32xf32>
      %65 = arith.truncf %64 : vector<16x32xf32> to vector<16x32xbf16>
      %c0_32 = arith.constant 0 : index
      %c0_33 = arith.constant 0 : index
      %66 = vector.load %arg8[%c0_32, %c0_33] : memref<32x32xbf16, #tpu.memory_space<vmem>>, vector<32x32xbf16>
      %cst_34 = arith.constant dense<0.000000e+00> : vector<16x32xf32>
      %67 = tpu.matmul %65, %66, %cst_34 {dimension_numbers = #tpu.dot_dimension_numbers<[1], [0], [0], [1], [0, 0, 1, 1], [], []>} : vector<16x32xbf16>, vector<32x32xbf16>, vector<16x32xf32> -> vector<16x32xf32>
      %c0_35 = arith.constant 0 : index
      %c0_36 = arith.constant 0 : index
      %68 = vector.load %arg9[%c0_35, %c0_36] : memref<1x32xf32, #tpu.memory_space<vmem>>, vector<1x32xf32>
      %69 = vector.broadcast %68 : vector<1x32xf32> to vector<16x32xf32>
      %70 = arith.addf %67, %69 : vector<16x32xf32>
      %cst_37 = arith.constant 5.000000e-01 : f32
      %71 = vector.broadcast %cst_37 : f32 to vector<16x32xf32>
      %72 = arith.mulf %71, %70 : vector<16x32xf32>
      %cst_38 = arith.constant 0.707106769 : f32
      %73 = vector.broadcast %cst_38 : f32 to vector<16x32xf32>
      %74 = arith.mulf %70, %73 : vector<16x32xf32>
      %75 = math.erf %74 : vector<16x32xf32>
      %cst_39 = arith.constant 1.000000e+00 : f32
      %76 = vector.broadcast %cst_39 : f32 to vector<16x32xf32>
      %77 = arith.addf %76, %75 : vector<16x32xf32>
      %78 = arith.mulf %72, %77 : vector<16x32xf32>
      %c0_40 = arith.constant 0 : index
      %c0_41 = arith.constant 0 : index
      %79 = vector.load %arg10[%c0_40, %c0_41] : memref<1x32xf32, #tpu.memory_space<vmem>>, vector<1x32xf32>
      %c0_42 = arith.constant 0 : index
      %c0_43 = arith.constant 0 : index
      %80 = vector.load %arg11[%c0_42, %c0_43] : memref<1x32xf32, #tpu.memory_space<vmem>>, vector<1x32xf32>
      %cst_44 = arith.constant dense<0.000000e+00> : vector<16xf32>
      %81 = vector.multi_reduction <add>, %78, %cst_44 [1] : vector<16x32xf32> to vector<16xf32>
      %82 = vector.shape_cast %81 : vector<16xf32> to vector<16x1xf32>
      %cst_45 = arith.constant 3.200000e+01 : f32
      %83 = vector.broadcast %cst_45 : f32 to vector<16x1xf32>
      %84 = arith.divf %82, %83 : vector<16x1xf32>
      %85 = vector.broadcast %84 : vector<16x1xf32> to vector<16x32xf32>
      %86 = arith.subf %78, %85 : vector<16x32xf32>
      %87 = arith.mulf %86, %86 : vector<16x32xf32>
      %cst_46 = arith.constant dense<0.000000e+00> : vector<16xf32>
      %88 = vector.multi_reduction <add>, %87, %cst_46 [1] : vector<16x32xf32> to vector<16xf32>
      %89 = vector.shape_cast %88 : vector<16xf32> to vector<16x1xf32>
      %cst_47 = arith.constant 3.200000e+01 : f32
      %90 = vector.broadcast %cst_47 : f32 to vector<16x1xf32>
      %91 = arith.divf %89, %90 : vector<16x1xf32>
      %92 = vector.broadcast %84 : vector<16x1xf32> to vector<16x32xf32>
      %93 = arith.subf %78, %92 : vector<16x32xf32>
      %cst_48 = arith.constant 9.99999996E-13 : f32
      %94 = vector.broadcast %cst_48 : f32 to vector<16x1xf32>
      %95 = arith.addf %91, %94 : vector<16x1xf32>
      %96 = math.rsqrt %95 : vector<16x1xf32>
      %97 = vector.broadcast %96 : vector<16x1xf32> to vector<16x32xf32>
      %98 = arith.mulf %93, %97 : vector<16x32xf32>
      %99 = vector.broadcast %79 : vector<1x32xf32> to vector<16x32xf32>
      %100 = arith.mulf %98, %99 : vector<16x32xf32>
      %101 = vector.broadcast %80 : vector<1x32xf32> to vector<16x32xf32>
      %102 = arith.addf %100, %101 : vector<16x32xf32>
      %103 = arith.truncf %102 : vector<16x32xf32> to vector<16x32xbf16>
      %c0_49 = arith.constant 0 : index
      %c0_50 = arith.constant 0 : index
      %104 = vector.load %arg12[%c0_49, %c0_50] : memref<32x32xbf16, #tpu.memory_space<vmem>>, vector<32x32xbf16>
      %cst_51 = arith.constant dense<0.000000e+00> : vector<16x32xf32>
      %105 = tpu.matmul %103, %104, %cst_51 {dimension_numbers = #tpu.dot_dimension_numbers<[1], [0], [0], [1], [0, 0, 1, 1], [], []>} : vector<16x32xbf16>, vector<32x32xbf16>, vector<16x32xf32> -> vector<16x32xf32>
      %c0_52 = arith.constant 0 : index
      %c0_53 = arith.constant 0 : index
      %106 = vector.load %arg13[%c0_52, %c0_53] : memref<1x32xf32, #tpu.memory_space<vmem>>, vector<1x32xf32>
      %107 = vector.broadcast %106 : vector<1x32xf32> to vector<16x32xf32>
      %108 = arith.addf %105, %107 : vector<16x32xf32>
      %cst_54 = arith.constant 5.000000e-01 : f32
      %109 = vector.broadcast %cst_54 : f32 to vector<16x32xf32>
      %110 = arith.mulf %109, %108 : vector<16x32xf32>
      %cst_55 = arith.constant 0.707106769 : f32
      %111 = vector.broadcast %cst_55 : f32 to vector<16x32xf32>
      %112 = arith.mulf %108, %111 : vector<16x32xf32>
      %113 = math.erf %112 : vector<16x32xf32>
      %cst_56 = arith.constant 1.000000e+00 : f32
      %114 = vector.broadcast %cst_56 : f32 to vector<16x32xf32>
      %115 = arith.addf %114, %113 : vector<16x32xf32>
      %116 = arith.mulf %110, %115 : vector<16x32xf32>
      %c0_57 = arith.constant 0 : index
      %c0_58 = arith.constant 0 : index
      %117 = vector.load %arg14[%c0_57, %c0_58] : memref<1x32xf32, #tpu.memory_space<vmem>>, vector<1x32xf32>
      %c0_59 = arith.constant 0 : index
      %c0_60 = arith.constant 0 : index
      %118 = vector.load %arg15[%c0_59, %c0_60] : memref<1x32xf32, #tpu.memory_space<vmem>>, vector<1x32xf32>
      %cst_61 = arith.constant dense<0.000000e+00> : vector<16xf32>
      %119 = vector.multi_reduction <add>, %116, %cst_61 [1] : vector<16x32xf32> to vector<16xf32>
      %120 = vector.shape_cast %119 : vector<16xf32> to vector<16x1xf32>
      %cst_62 = arith.constant 3.200000e+01 : f32
      %121 = vector.broadcast %cst_62 : f32 to vector<16x1xf32>
      %122 = arith.divf %120, %121 : vector<16x1xf32>
      %123 = vector.broadcast %122 : vector<16x1xf32> to vector<16x32xf32>
      %124 = arith.subf %116, %123 : vector<16x32xf32>
      %125 = arith.mulf %124, %124 : vector<16x32xf32>
      %cst_63 = arith.constant dense<0.000000e+00> : vector<16xf32>
      %126 = vector.multi_reduction <add>, %125, %cst_63 [1] : vector<16x32xf32> to vector<16xf32>
      %127 = vector.shape_cast %126 : vector<16xf32> to vector<16x1xf32>
      %cst_64 = arith.constant 3.200000e+01 : f32
      %128 = vector.broadcast %cst_64 : f32 to vector<16x1xf32>
      %129 = arith.divf %127, %128 : vector<16x1xf32>
      %130 = vector.broadcast %122 : vector<16x1xf32> to vector<16x32xf32>
      %131 = arith.subf %116, %130 : vector<16x32xf32>
      %cst_65 = arith.constant 9.99999996E-13 : f32
      %132 = vector.broadcast %cst_65 : f32 to vector<16x1xf32>
      %133 = arith.addf %129, %132 : vector<16x1xf32>
      %134 = math.rsqrt %133 : vector<16x1xf32>
      %135 = vector.broadcast %134 : vector<16x1xf32> to vector<16x32xf32>
      %136 = arith.mulf %131, %135 : vector<16x32xf32>
      %137 = vector.broadcast %117 : vector<1x32xf32> to vector<16x32xf32>
      %138 = arith.mulf %136, %137 : vector<16x32xf32>
      %139 = vector.broadcast %118 : vector<1x32xf32> to vector<16x32xf32>
      %140 = arith.addf %138, %139 : vector<16x32xf32>
      %141 = arith.truncf %140 : vector<16x32xf32> to vector<16x32xbf16>
      %c0_66 = arith.constant 0 : index
      %c0_67 = arith.constant 0 : index
      %142 = vector.load %arg19[%c0_66, %c0_67] : memref<16x32xbf16, #tpu.memory_space<vmem>>, vector<16x32xbf16>
      tpu.vector_store %arg19[%c0_66, %c0_67], %141 {strides = array<i32>} : memref<16x32xbf16, #tpu.memory_space<vmem>>, vector<16x32xbf16>,
    } else {
    }
    %c0 = arith.constant 0 : index
    %c0_1 = arith.constant 0 : index
    %3 = vector.load %arg19[%c0, %c0_1] : memref<16x32xbf16, #tpu.memory_space<vmem>>, vector<16x32xbf16>
    %c0_2 = arith.constant 0 : index
    %c0_3 = arith.constant 0 : index
    %4 = vector.load %arg16[%c0_2, %c0_3] : memref<32x128xbf16, #tpu.memory_space<vmem>>, vector<32x128xbf16>
    %cst = arith.constant dense<0.000000e+00> : vector<16x128xf32>
    %5 = tpu.matmul %3, %4, %cst {dimension_numbers = #tpu.dot_dimension_numbers<[1], [0], [0], [1], [0, 0, 1, 1], [], []>} : vector<16x32xbf16>, vector<32x128xbf16>, vector<16x128xf32> -> vector<16x128xf32>
    %c0_4 = arith.constant 0 : index
    %c0_5 = arith.constant 0 : index
    %6 = vector.load %arg17[%c0_4, %c0_5] : memref<1x128xf32, #tpu.memory_space<vmem>>, vector<1x128xf32>
    %7 = vector.broadcast %6 : vector<1x128xf32> to vector<16x128xf32>
    %8 = arith.addf %5, %7 : vector<16x128xf32>
    %9 = arith.truncf %8 : vector<16x128xf32> to vector<16x128xbf16>
    %c0_6 = arith.constant 0 : index
    %c0_7 = arith.constant 0 : index
    %10 = vector.load %arg18[%c0_6, %c0_7] : memref<16x128xbf16, #tpu.memory_space<vmem>>, vector<16x128xbf16>
    tpu.vector_store %arg18[%c0_6, %c0_7], %9 {strides = array<i32>} : memref<16x128xbf16, #tpu.memory_space<vmem>>, vector<16x128xbf16>,
    return
  }
  func.func @transform_0(%arg0: i32, %arg1: i32) -> (i32, i32) {
    %c0_i32 = arith.constant 0 : i32
    %c0_i32_0 = arith.constant 0 : i32
    return %arg0, %c0_i32 : i32, i32
  }
  func.func @transform_1(%arg0: i32, %arg1: i32) -> (i32, i32) {
    %c0_i32 = arith.constant 0 : i32
    %c0_i32_0 = arith.constant 0 : i32
    return %arg0, %c0_i32 : i32, i32
  }
  func.func @transform_2(%arg0: i32, %arg1: i32) -> (i32, i32) {
    %c0_i32 = arith.constant 0 : i32
    %c0_i32_0 = arith.constant 0 : i32
    %c0_i32_1 = arith.constant 0 : i32
    return %c0_i32, %c0_i32_0 : i32, i32
  }
  func.func @transform_3(%arg0: i32, %arg1: i32) -> (i32, i32) {
    %c0_i32 = arith.constant 0 : i32
    %c0_i32_0 = arith.constant 0 : i32
    %c0_i32_1 = arith.constant 0 : i32
    return %c0_i32, %c0_i32_0 : i32, i32
  }
  func.func @transform_4(%arg0: i32, %arg1: i32) -> (i32, i32) {
    %c0_i32 = arith.constant 0 : i32
    %c0_i32_0 = arith.constant 0 : i32
    %c0_i32_1 = arith.constant 0 : i32
    return %c0_i32, %c0_i32_0 : i32, i32
  }
  func.func @transform_5(%arg0: i32, %arg1: i32) -> (i32, i32) {
    %c0_i32 = arith.constant 0 : i32
    %c0_i32_0 = arith.constant 0 : i32
    %c0_i32_1 = arith.constant 0 : i32
    return %c0_i32, %c0_i32_0 : i32, i32
  }
  func.func @transform_6(%arg0: i32, %arg1: i32) -> (i32, i32) {
    %c0_i32 = arith.constant 0 : i32
    %c0_i32_0 = arith.constant 0 : i32
    %c0_i32_1 = arith.constant 0 : i32
    return %c0_i32, %c0_i32_0 : i32, i32
  }
  func.func @transform_7(%arg0: i32, %arg1: i32) -> (i32, i32) {
    %c0_i32 = arith.constant 0 : i32
    %c0_i32_0 = arith.constant 0 : i32
    %c0_i32_1 = arith.constant 0 : i32
    return %c0_i32, %c0_i32_0 : i32, i32
  }
  func.func @transform_8(%arg0: i32, %arg1: i32) -> (i32, i32) {
    %c0_i32 = arith.constant 0 : i32
    %c0_i32_0 = arith.constant 0 : i32
    %c0_i32_1 = arith.constant 0 : i32
    return %c0_i32, %c0_i32_0 : i32, i32
  }
  func.func @transform_9(%arg0: i32, %arg1: i32) -> (i32, i32) {
    %c0_i32 = arith.constant 0 : i32
    %c0_i32_0 = arith.constant 0 : i32
    %c0_i32_1 = arith.constant 0 : i32
    return %c0_i32, %c0_i32_0 : i32, i32
  }
  func.func @transform_10(%arg0: i32, %arg1: i32) -> (i32, i32) {
    %c0_i32 = arith.constant 0 : i32
    %c0_i32_0 = arith.constant 0 : i32
    %c0_i32_1 = arith.constant 0 : i32
    return %c0_i32, %c0_i32_0 : i32, i32
  }
  func.func @transform_11(%arg0: i32, %arg1: i32) -> (i32, i32) {
    %c0_i32 = arith.constant 0 : i32
    %c0_i32_0 = arith.constant 0 : i32
    %c0_i32_1 = arith.constant 0 : i32
    return %c0_i32, %c0_i32_0 : i32, i32
  }
  func.func @transform_12(%arg0: i32, %arg1: i32) -> (i32, i32) {
    %c0_i32 = arith.constant 0 : i32
    %c0_i32_0 = arith.constant 0 : i32
    %c0_i32_1 = arith.constant 0 : i32
    return %c0_i32, %c0_i32_0 : i32, i32
  }
  func.func @transform_13(%arg0: i32, %arg1: i32) -> (i32, i32) {
    %c0_i32 = arith.constant 0 : i32
    %c0_i32_0 = arith.constant 0 : i32
    %c0_i32_1 = arith.constant 0 : i32
    return %c0_i32, %c0_i32_0 : i32, i32
  }
  func.func @transform_14(%arg0: i32, %arg1: i32) -> (i32, i32) {
    %c0_i32 = arith.constant 0 : i32
    %c0_i32_0 = arith.constant 0 : i32
    return %c0_i32, %arg1 : i32, i32
  }
  func.func @transform_15(%arg0: i32, %arg1: i32) -> (i32, i32) {
    %c0_i32 = arith.constant 0 : i32
    %c0_i32_0 = arith.constant 0 : i32
    return %c0_i32, %arg1 : i32, i32
  }
  func.func @transform_16(%arg0: i32, %arg1: i32) -> (i32, i32) {
    %c0_i32 = arith.constant 0 : i32
    return %arg0, %arg1 : i32, i32
  }
}

</mosaic_0001>

<bundles_post_ra>
// kernel: tpu_custom_call.1
= control target key start
LH: loop header
LB: loop body
LE: loop exit
PB: predicated region body
PF: predicated region fallthrough
CT: control target
= control target key end

     0   :  { %s1334_s0 = inlined_call_operand.vmem [shape: s32[16,1], index: 0, kind: input, shape index: {}]   ;;  %s1335_s1 = inlined_call_operand.vmem [shape: f32[16,32], index: 1, kind: input, shape index: {}]   ;;  %s1336_s2 = inlined_call_operand.hbm [shape: bf16[4,32], index: 2, kind: input, shape index: {}]   ;;  %s1337_s3 = inlined_call_operand.hbm [shape: bf16[32,32], index: 3, kind: input, shape index: {}]   ;;  %s1338_s4 = inlined_call_operand.hbm [shape: f32[1,32], index: 4, kind: input, shape index: {}]   ;;  %s1339_s5 = inlined_call_operand.vmem [shape: f32[1,32], index: 5, kind: input, shape index: {}]   ;;  %s1340_s6 = inlined_call_operand.vmem [shape: bf16[32,32], index: 6, kind: input, shape index: {}]   ;;  %s1341_s7 = inlined_call_operand.vmem [shape: f32[1,32], index: 7, kind: input, shape index: {}]   ;;  %s1342_s8 = inlined_call_operand.hbm [shape: f32[1,32], index: 8, kind: input, shape index: {}]   ;;  %s1343_s9 = inlined_call_operand.hbm [shape: f32[1,32], index: 9, kind: input, shape index: {}]   ;;  %s1344_s10 = inlined_call_operand.vmem [shape: bf16[32,32], index: 10, kind: input, shape index: {}]   ;;  %s1345_s11 = inlined_call_operand.hbm [shape: f32[1,32], index: 11, kind: input, shape index: {}]   ;;  %s1346_s12 = inlined_call_operand.hbm [shape: f32[1,32], index: 12, kind: input, shape index: {}]   ;;  %s1347_s13 = inlined_call_operand.hbm [shape: f32[1,32], index: 13, kind: input, shape index: {}]   ;;  %s1348_s14 = inlined_call_operand.vmem [shape: bf16[32,128], index: 14, kind: input, shape index: {}]   ;;  %s1349_s15 = inlined_call_operand.vmem [shape: f32[1,128], index: 15, kind: input, shape index: {}]   ;;  %s1350_s16 = inlined_call_operand.hbm [shape: bf16[16,128], index: 16, kind: output, shape index: {}]  }
   0x1   :  { %1353 = sst [smem:[#allocation24_spill]] %s1334_s0 }
   0x2   :  { %1354 = sst [smem:[#allocation25_spill]] %s1350_s16 }
   0x3   :  { %21 = vsyncpa [#allocation4], 0 }
   0x4   :  { %22 = vsyncpa [#allocation7], 0 }
   0x5   :  { %23 = vsyncpa [#allocation10], 0 }
   0x6   :  { %24 = vsyncpa [#allocation13], 0 }
   0x7   :  { %25 = vsyncpa [#allocation16], 0 }
   0x8   :  { %26 = vsyncpa [#allocation5], 0  ;;  %s1044_s21 = smov [#allocation6]   ;;  %s834_s25 = scalar_lea.hbm %s1337_s3, 256 }
   0x9   :  { %s46_s22 = sshll.u32 %s1044_s21, 4  ;;  %p835_p0 = scmp.ne.s32.totalorder %s1337_s3, %s834_s25  ;;  %s47_s22 = int_to_ptr.vmem [resolvable:$true] %s46_s22 }
   0xa   :  { %p838_p1 = scmp.lt.u32.totalorder %s834_s25, %s1337_s3 }
   0xc   :  { %p840_p2 = pnand %p838_p1, %p835_p0 }
   0xe   :  { %843 = shalt.err (!%p840_p2)
}
   0xf   :  { %s844_s30 = scalar_lea.vmem %s47_s22, 256  ;;  %p849_p4 = scmp.lt.s32.totalorder %s47_s22, %s47_s22 }
  0x10   :  { %p845_p3 = scmp.ne.s32.totalorder %s47_s22, %s844_s30  ;;  %p850_p5 = scmp.lt.s32.totalorder %s844_s30, %s844_s30 }
  0x12   :  { %p851_p6 = por %p850_p5, %p849_p4 }
  0x14   :  { %p852_p7 = pnand %p851_p6, %p845_p3 }
  0x16   :  { %855 = shalt.err (!%p852_p7)
}
  0x17   :  { %s1045_s0 = smov 64   ;;  %s1046_s17 = smov 4  }
  0x18   :  { %52 = dma.hbm_to_vmem [thread:$0]  %s1337_s3, 256, %s47_s22, [#allocation7], %s1045_s0, %s1045_s0, %s1046_s17  }
  0x19   :  { %s1047_s20 = smov [#allocation9]   ;;  %s1048_s23 = smov [#allocation12]  }
  0x1a   :  { %s75_s21 = sshll.u32 %s1047_s20, 4  ;;  %s97_s24 = sshll.u32 %s1048_s23, 4  ;;  %s76_s21 = int_to_ptr.vmem [resolvable:$true] %s75_s21  ;;  %s98_s24 = int_to_ptr.vmem [resolvable:$true] %s97_s24 }
  0x1b   :  { %s856_s27 = scalar_lea.hbm %s1342_s8, 16 }
  0x1c   :  { %p857_p8 = scmp.ne.s32.totalorder %s1342_s8, %s856_s27  ;;  %p860_p9 = scmp.lt.u32.totalorder %s856_s27, %s1342_s8 }
  0x1e   :  { %p862_p10 = pnand %p860_p9, %p857_p8 }
  0x20   :  { %865 = shalt.err (!%p862_p10)
}
  0x21   :  { %s866_s3 = scalar_lea.vmem %s76_s21, 16  ;;  %s870_s22 = scalar_lea.vmem %s76_s21, 32 }
  0x22   :  { %p867_p11 = scmp.ne.s32.totalorder %s76_s21, %s866_s3  ;;  %p871_p12 = scmp.lt.s32.totalorder %s76_s21, %s76_s21 }
  0x23   :  { %p872_p13 = scmp.lt.s32.totalorder %s870_s22, %s866_s3 }
  0x25   :  { %p873_p0 = por %p872_p13, %p871_p12 }
  0x27   :  { %p874_p1 = pnand %p873_p0, %p867_p11 }
  0x29   :  { %877 = shalt.err (!%p874_p1)
}
  0x2a   :  { %78 = dma.hbm_to_vmem [thread:$0]  %s1342_s8, 16, %s76_s21, [#allocation10]  }
  0x2b   :  { %s878_s16 = scalar_lea.hbm %s1345_s11, 16 }
  0x2c   :  { %p879_p2 = scmp.ne.s32.totalorder %s1345_s11, %s878_s16  ;;  %p882_p3 = scmp.lt.u32.totalorder %s878_s16, %s1345_s11 }
  0x2e   :  { %p884_p4 = pnand %p882_p3, %p879_p2 }
  0x30   :  { %887 = shalt.err (!%p884_p4)
}
  0x31   :  { %s888_s29 = scalar_lea.vmem %s98_s24, 16  ;;  %s892_s30 = scalar_lea.vmem %s98_s24, 32 }
  0x32   :  { %p889_p5 = scmp.ne.s32.totalorder %s98_s24, %s888_s29  ;;  %p893_p6 = scmp.lt.s32.totalorder %s98_s24, %s98_s24 }
  0x33   :  { %p894_p7 = scmp.lt.s32.totalorder %s892_s30, %s888_s29 }
  0x35   :  { %p895_p8 = por %p894_p7, %p893_p6 }
  0x37   :  { %p896_p9 = pnand %p895_p8, %p889_p5 }
  0x39   :  { %899 = shalt.err (!%p896_p9)
}
  0x3a   :  { %100 = dma.hbm_to_vmem [thread:$0]  %s1345_s11, 16, %s98_s24, [#allocation13]  }
  0x3b   :  { %s1049_s3 = smov [#allocation3]   ;;  %s1050_s18 = smov [#allocation8]  }
  0x3c   :  { %s37_s22 = sshll.u32 %s1049_s3, 4  ;;  %s59_s19 = sshll.u32 %s1050_s18, 4  ;;  %s38_s22 = int_to_ptr.vmem [resolvable:$true] %s37_s22  ;;  %s60_s19 = int_to_ptr.vmem [resolvable:$true] %s59_s19 }
  0x3d   :  { %s900_s16 = scalar_lea.hbm %s1336_s2, 32 }
  0x3e   :  { %p901_p10 = scmp.ne.s32.totalorder %s1336_s2, %s900_s16  ;;  %p904_p11 = scmp.lt.u32.totalorder %s900_s16, %s1336_s2 }
  0x40   :  { %p906_p12 = pnand %p904_p11, %p901_p10 }
  0x42   :  { %909 = shalt.err (!%p906_p12)
}
  0x43   :  { %s910_s11 = scalar_lea.vmem %s38_s22, 32  ;;  %p915_p0 = scmp.lt.s32.totalorder %s38_s22, %s38_s22 }
  0x44   :  { %p911_p13 = scmp.ne.s32.totalorder %s38_s22, %s910_s11  ;;  %p916_p1 = scmp.lt.s32.totalorder %s910_s11, %s910_s11 }
  0x46   :  { %p917_p2 = por %p916_p1, %p915_p0 }
  0x48   :  { %p918_p3 = pnand %p917_p2, %p911_p13 }
  0x4a   :  { %921 = shalt.err (!%p918_p3)
}
  0x4b   :  { %40 = dma.hbm_to_vmem [thread:$0]  %s1336_s2, 32, %s38_s22, [#allocation4]  }
  0x4c   :  { %s922_s21 = scalar_lea.hbm %s1338_s4, 16 }
  0x4d   :  { %p923_p4 = scmp.ne.s32.totalorder %s1338_s4, %s922_s21  ;;  %p926_p5 = scmp.lt.u32.totalorder %s922_s21, %s1338_s4 }
  0x4f   :  { %p928_p6 = pnand %p926_p5, %p923_p4 }
  0x51   :  { %931 = shalt.err (!%p928_p6)
}
  0x52   :  { %s932_s16 = scalar_lea.vmem %s60_s19, 16  ;;  %s936_s25 = scalar_lea.vmem %s60_s19, 32 }
  0x53   :  { %p933_p7 = scmp.ne.s32.totalorder %s60_s19, %s932_s16  ;;  %p937_p8 = scmp.lt.s32.totalorder %s60_s19, %s60_s19 }
  0x54   :  { %p938_p9 = scmp.lt.s32.totalorder %s936_s25, %s932_s16 }
  0x56   :  { %p939_p10 = por %p938_p9, %p937_p8 }
  0x58   :  { %p940_p11 = pnand %p939_p10, %p933_p7 }
  0x5a   :  { %943 = shalt.err (!%p940_p11)
}
  0x5b   :  { %62 = dma.hbm_to_vmem [thread:$0]  %s1338_s4, 16, %s60_s19, [#allocation7]  }
  0x5c   :  { %s1051_s26 = smov [#allocation11]   ;;  %s1052_s28 = smov [#allocation14]  }
  0x5d   :  { %s85_s27 = sshll.u32 %s1051_s26, 4  ;;  %s107_s11 = sshll.u32 %s1052_s28, 4  ;;  %s86_s27 = int_to_ptr.vmem [resolvable:$true] %s85_s27  ;;  %s108_s11 = int_to_ptr.vmem [resolvable:$true] %s107_s11 }
  0x5e   :  { %s944_s30 = scalar_lea.hbm %s1343_s9, 16 }
  0x5f   :  { %p945_p12 = scmp.ne.s32.totalorder %s1343_s9, %s944_s30  ;;  %p948_p13 = scmp.lt.u32.totalorder %s944_s30, %s1343_s9 }
  0x61   :  { %p950_p0 = pnand %p948_p13, %p945_p12 }
  0x63   :  { %953 = shalt.err (!%p950_p0)
}
  0x64   :  { %s954_s4 = scalar_lea.vmem %s86_s27, 16  ;;  %s958_s19 = scalar_lea.vmem %s86_s27, 32 }
  0x65   :  { %p955_p1 = scmp.ne.s32.totalorder %s86_s27, %s954_s4  ;;  %p959_p2 = scmp.lt.s32.totalorder %s86_s27, %s86_s27 }
  0x66   :  { %p960_p3 = scmp.lt.s32.totalorder %s958_s19, %s954_s4 }
  0x68   :  { %p961_p4 = por %p960_p3, %p959_p2 }
  0x6a   :  { %p962_p5 = pnand %p961_p4, %p955_p1 }
  0x6c   :  { %965 = shalt.err (!%p962_p5)
}
  0x6d   :  { %88 = dma.hbm_to_vmem [thread:$0]  %s1343_s9, 16, %s86_s27, [#allocation10]  }
  0x6e   :  { %s966_s2 = scalar_lea.hbm %s1346_s12, 16 }
  0x6f   :  { %p967_p6 = scmp.ne.s32.totalorder %s1346_s12, %s966_s2  ;;  %p970_p7 = scmp.lt.u32.totalorder %s966_s2, %s1346_s12 }
  0x71   :  { %p972_p8 = pnand %p970_p7, %p967_p6 }
  0x73   :  { %975 = shalt.err (!%p972_p8)
}
  0x74   :  { %s976_s29 = scalar_lea.vmem %s108_s11, 16  ;;  %s980_s30 = scalar_lea.vmem %s108_s11, 32 }
  0x75   :  { %p977_p9 = scmp.ne.s32.totalorder %s108_s11, %s976_s29  ;;  %p981_p10 = scmp.lt.s32.totalorder %s108_s11, %s108_s11 }
  0x76   :  { %p982_p11 = scmp.lt.s32.totalorder %s980_s30, %s976_s29 }
  0x78   :  { %p983_p12 = por %p982_p11, %p981_p10 }
  0x7a   :  { %p984_p13 = pnand %p983_p12, %p977_p9 }
  0x7c   :  { %987 = shalt.err (!%p984_p13)
}
  0x7d   :  { %110 = dma.hbm_to_vmem [thread:$0]  %s1346_s12, 16, %s108_s11, [#allocation13]  }
  0x7e   :  { %s1053_s8 = smov [#allocation15]   ;;  %s988_s4 = scalar_lea.hbm %s1347_s13, 16 }
  0x7f   :  { %s117_s21 = sshll.u32 %s1053_s8, 4  ;;  %p989_p0 = scmp.ne.s32.totalorder %s1347_s13, %s988_s4  ;;  %s118_s21 = int_to_ptr.vmem [resolvable:$true] %s117_s21 }
  0x80   :  { %p992_p1 = scmp.lt.u32.totalorder %s988_s4, %s1347_s13 }
  0x82   :  { %p994_p2 = pnand %p992_p1, %p989_p0 }
  0x84   :  { %997 = shalt.err (!%p994_p2)
}
  0x85   :  { %s998_s25 = scalar_lea.vmem %s118_s21, 16  ;;  %s1002_s12 = scalar_lea.vmem %s118_s21, 32 }
  0x86   :  { %p999_p3 = scmp.ne.s32.totalorder %s118_s21, %s998_s25  ;;  %p1003_p4 = scmp.lt.s32.totalorder %s118_s21, %s118_s21 }
  0x87   :  { %p1004_p5 = scmp.lt.s32.totalorder %s1002_s12, %s998_s25 }
  0x89   :  { %p1005_p6 = por %p1004_p5, %p1003_p4 }
  0x8b   :  { %p1006_p7 = pnand %p1005_p6, %p999_p3 }
  0x8d   :  { %1009 = shalt.err (!%p1006_p7)
}
  0x8e   :  { %120 = dma.hbm_to_vmem [thread:$0]  %s1347_s13, 16, %s118_s21, [#allocation16]  }
  0x8f   :  { %1032 = dma.done.wait [#allocation4], 32  }
  0x90   :  { %1033 = vsyncadd [#allocation4], 4294967264 }
  0x91   :  { %1034 = dma.done.wait [#allocation7], 272  }
  0x92   :  { %1035 = vsyncadd [#allocation7], 4294967024 }
  0x93   :  { %1036 = dma.done.wait [#allocation10], 32  }
  0x94   :  { %1037 = vsyncadd [#allocation10], 4294967264 }
  0x95   :  { %1038 = dma.done.wait [#allocation13], 32  }
  0x96   :  { %1039 = vsyncadd [#allocation13], 4294967264 }
  0x97   :  { %1040 = dma.done.wait [#allocation16], 16  }
  0x98   :  { %1041 = vsyncadd [#allocation16], 4294967280  ;;  %v1054_v0 = vmov 0   ;;  %v1055_v1 = vmov 0.0   ;;  %s1355_s13 = sld [smem:[#allocation24_spill]]  ;;  %vm188_vm6 = vcmask 1041408   ;;  %v168_v12 = vlaneseq }
  0x99   :  { %801 = vset.pattern.permute.xlu0 %v1054_v0  ;;  %745 = vmatprep.subr.bf16.mxu0 %v1055_v1  ;;  %v183_v10 = vld [vmem:[#allocation3] sm:$0x3]  ;;  %vm1056_vm7 = vmmov 0   ;;  %vm184_vm10 = vcmask 31744   ;;  %v802_v18 = vld [vmem:[#allocation6] sm:$0xff]   ;;  %v803_v20 = vld [vmem:[#allocation6 + $0x8] sm:$0xff]  }
  0x9a   :  { %759 = vmatprep.subr.bf16.mxu1 %v1055_v1  ;;  %v190_v11 = vsel %vm188_vm6, %v183_v10, 0  ;;  %747 = vmatprep.mubr.msk.bf16.mxu0 %vm1056_vm7, %v1055_v1  ;;  %v169_v13 = vand.u32 127, %v168_v12  ;;  %v233_v21 = vld [vmem:[%s1335_s1] sm:$0xff]  ;;  %v234_v22 = vld [vmem:[%s1335_s1 + $0x8] sm:$0xff]  ;;  %vm252_vm11 = vcmask 261120   ;;  %s1057_s2 = smov [#allocation17]  }
  0x9b   :  { %746 = vmatpush3.bf16.msra.mxu0 %v190_v11  ;;  %763 = vmatprep.mubr.msk.bf16.mxu1 %vm1056_vm7, %v1055_v1  ;;  %v235_v23 = vpack.c.bf16 %v234_v22, %v233_v21  ;;  %v804_v50 = vld [vmem:[%s1340_s6] sm:$0xff]   ;;  %v805_v51 = vld [vmem:[%s1340_s6 + $0x8] sm:$0xff]   ;;  %v704_v60 = vld [vmem:[#allocation8] ss:$0 sm:$0xff]  ;;  %s682_s22 = sshll.u32 %s1057_s2, 4  ;;  %s683_s22 = int_to_ptr.vmem [resolvable:$true] %s682_s22 }
  0x9c   :  { %751 = vmatprep.subr.bf16.mxu0 %v1055_v1  ;;  %760 = vmatpush3.bf16.msra.mxu1 %v804_v50  ;;  %v705_v0 = vld [vmem:[%s1339_s5] ss:$0 sm:$0xff]  ;;  %s1010_s26 = scalar_lea.vmem %s683_s22, 128  ;;  %p1015_p9 = scmp.lt.s32.totalorder %s683_s22, %s683_s22 }
  0x9d   :  { %761 = vmatprep.subr.bf16.mxu1 %v1055_v1  ;;  %p1011_p8 = scmp.ne.s32.totalorder %s683_s22, %s1010_s26  ;;  %p1016_p10 = scmp.lt.s32.totalorder %s1010_s26, %s1010_s26 }
  0x9e   :  { %v154_v2 = vld [vmem:[%s1355_s13] sm:$0xff]  ;;  %v155_v3 = vld [vmem:[%s1355_s13 + $0x8] sm:$0xff] }
  0x9f   :  { %vm156_vm0 = vcmp.eq.s32.totalorder %v154_v2, 4294967196  ;;  %vm157_vm1 = vcmp.eq.s32.totalorder %v155_v3, 4294967196  ;;  %p1017_p11 = por %p1016_p10, %p1015_p9 }
  0xa0   :  { %v158_v4 = vsel %vm156_vm0, 0, %v154_v2  ;;  %v159_v5 = vsel %vm157_vm1, 0, %v155_v3  ;;  %762 = vmatpush3.bf16.msra.mxu1 %v805_v51 }
  0xa1   :  { %vm160_vm2 = vcmp.gt.s32.totalorder %v158_v4, 0  ;;  %vm162_vm3 = vcmp.gt.s32.totalorder %v159_v5, 0  ;;  %767 = vmatprep.subr.bf16.mxu1 %v1055_v1  ;;  %p1018_p12 = pnand %p1017_p11, %p1011_p8 }
  0xa2   :  { %v161_v6 = vsel %vm160_vm2, %v158_v4, 0  ;;  %v163_v7 = vsel %vm162_vm3, %v159_v5, 0 }
  0xa3   :  { %vm164_vm4 = vcmp.lt.s32.totalorder %v161_v6, 3  ;;  %vm166_vm5 = vcmp.lt.s32.totalorder %v163_v7, 3 }
  0xa4   :  { %v165_v8 = vsel %vm164_vm4, %v161_v6, 3  ;;  %v167_v9 = vsel %vm166_vm5, %v163_v7, 3  ;;  %v706_v6 = vld [vmem:[%s1341_s7] ss:$0 sm:$0xff] }
  0xa5   :  { %171 = vperm.xlu0 %801, %v165_v8  }
  0xa9   :  { %174 = vperm.xlu0 %801, %v167_v9  }
 0x124   :  { %v172_v14 = vpop.permute.xlu0 %171 }
 0x125   :  { %vm176_vm8 = vcmp.eq.s32.totalorder %v169_v13, %v172_v14 }
 0x126   :  { %v698_v16 = vsel %vm176_vm8, 1.0, %v1055_v1 }
 0x128   :  { %v175_v15 = vpop.permute.xlu0 %174 }
 0x129   :  { %vm177_vm9 = vcmp.eq.s32.totalorder %v169_v13, %v175_v15 }
 0x12a   :  { %v699_v17 = vsel %vm177_vm9, 1.0, %v1055_v1 }
 0x12b   :  { %v182_v19 = vpack.c.bf16 %v699_v17, %v698_v16 }
 0x12d   :  { %748 = vmatmul.mubr.msk.bf16.vlgmr.msra.gmra.mrb[0].mxu0 %vm184_vm10, %v182_v19 }
 0x12e   :  { %752 = vmatpush3.bf16.msra.mxu0 %v802_v18  ;;  %755 = vmatprep.mubr.msk.bf16.mxu0 %vm1056_vm7, %v1055_v1 }
 0x12f   :  { %753 = vmatprep.subr.bf16.mxu0 %v1055_v1 }
 0x132   :  { %754 = vmatpush3.bf16.msra.mxu0 %v803_v20 }
 0x133   :  { %775 = vmatprep.subr.bf16.mxu0 %v1055_v1 }
 0x139   :  { %756 = vmatmul.mubr.msk.bf16.vlgmr.msra.gmra.mrb[0].mxu0 %vm252_vm11, %v235_v23 }
 0x13a   :  { %779 = vmatprep.mubr.msk.bf16.mxu0 %vm1056_vm7, %v1055_v1 }
 0x20c   :  { %v290_v24 = vpop.f32.mrb[0].mxu0 }
 0x20d   :  { %v299_v25 = vmul.f32 0.70710677, %v290_v24  ;;  %v757_v26 = vpop.f32.mrb[1].mxu0  ;;  %v297_v31 = vmul.f32 0.5, %v290_v24 }
 0x20e   :  { %v293_v27 = vpop.f32.mrb[2].mxu0 }
 0x20f   :  { %810 = verf.f32 %v299_v25  ;;  %v300_v28 = vmul.f32 0.70710677, %v293_v27  ;;  %v758_v29 = vpop.f32.mrb[3].mxu0  ;;  %v298_v34 = vmul.f32 0.5, %v293_v27 }
 0x211   :  { %812 = verf.f32 %v300_v28 }
 0x219   :  { %v811_v30 = vpop.eup %810 }
 0x21a   :  { %v303_v32 = vadd.f32 1.0, %v811_v30 }
 0x21b   :  { %v813_v33 = vpop.eup %812 }
 0x21c   :  { %v305_v35 = vmul.f32 %v303_v32, %v297_v31  ;;  %v304_v36 = vadd.f32 1.0, %v813_v33 }
 0x21e   :  { %v309_v37 = vsel %vm252_vm11, %v305_v35, 0.0  ;;  %v306_v38 = vmul.f32 %v304_v36, %v298_v34  ;;  %v807_v36 = vld [vmem:[%s1344_s10 + $0x8] sm:$0xff]  }
 0x21f   :  { %310 = vadd.xlane.f32.xlu1 %v309_v37 }
 0x220   :  { %v312_v39 = vsel %vm252_vm11, %v306_v38, 0.0 }
 0x223   :  { %313 = vadd.xlane.f32.xlu1 %v312_v39 }
 0x2ac   :  { %v311_v40 = vpop.xlane.xlu1 %310 }
 0x2ad   :  { %v316_v41 = vmul.f32 0.03125, %v311_v40 }
 0x2af   :  { %v318_v42 = vsub.f32 %v305_v35, %v316_v41  ;;  %v806_v35 = vld [vmem:[%s1344_s10] sm:$0xff]  }
 0x2b0   :  { %v314_v43 = vpop.xlane.xlu1 %313 }
 0x2b1   :  { %v317_v44 = vmul.f32 0.03125, %v314_v43  ;;  %v320_v45 = vmul.f32 %v318_v42, %v318_v42 }
 0x2b3   :  { %v319_v46 = vsub.f32 %v306_v38, %v317_v44  ;;  %v322_v47 = vsel %vm252_vm11, %v320_v45, 0.0  ;;  %v710_v45 = vld [vmem:[#allocation9] ss:$0 sm:$0xff] }
 0x2b4   :  { %323 = vadd.xlane.f32.xlu0 %v322_v47 }
 0x2b5   :  { %v321_v48 = vmul.f32 %v319_v46, %v319_v46 }
 0x2b7   :  { %v325_v49 = vsel %vm252_vm11, %v321_v48, 0.0 }
 0x2b8   :  { %326 = vadd.xlane.f32.xlu1 %v325_v49  ;;  %v711_v49 = vld [vmem:[#allocation11] ss:$0 sm:$0xff] }
 0x341   :  { %v324_v52 = vpop.xlane.xlu0 %323 }
 0x342   :  { %v328_v53 = vmul.f32 0.03125, %v324_v52 }
 0x344   :  { %v330_v54 = vadd.f32 1e-12, %v328_v53 }
 0x345   :  { %v327_v55 = vpop.xlane.xlu1 %326 }
 0x346   :  { %814 = vrsqrt.f32 %v330_v54  ;;  %v329_v56 = vmul.f32 0.03125, %v327_v55  ;;  %v712_v54 = vld [vmem:[#allocation12] ss:$0 sm:$0xff] }
 0x348   :  { %v331_v57 = vadd.f32 1e-12, %v329_v56 }
 0x34a   :  { %816 = vrsqrt.f32 %v331_v57 }
 0x350   :  { %v815_v58 = vpop.eup %814 }
 0x351   :  { %v334_v59 = vmul.f32 %v815_v58, %v318_v42 }
 0x353   :  { %v342_v63 = vmul.f32 %v704_v60, %v334_v59 }
 0x354   :  { %v817_v61 = vpop.eup %816 }
 0x355   :  { %v335_v62 = vmul.f32 %v817_v61, %v319_v46  ;;  %v350_v3 = vadd.f32 %v705_v0, %v342_v63 }
 0x357   :  { %v343_v2 = vmul.f32 %v704_v60, %v335_v62 }
 0x359   :  { %v351_v4 = vadd.f32 %v705_v0, %v343_v2 }
 0x35b   :  { %v352_v5 = vpack.c.bf16 %v351_v4, %v350_v3 }
 0x35d   :  { %764 = vmatmul.mubr.msk.bf16.vlgmr.msra.gmra.mrb[0].mxu1 %vm252_vm11, %v352_v5 }
 0x35e   :  { %771 = vmatprep.mubr.msk.bf16.mxu1 %vm1056_vm7, %v1055_v1  ;;  %768 = vmatpush3.bf16.msra.mxu1 %v806_v35 }
 0x35f   :  { %769 = vmatprep.subr.bf16.mxu1 %v1055_v1 }
 0x362   :  { %770 = vmatpush3.bf16.msra.mxu1 %v807_v36 }
 0x430   :  { %v413_v7 = vpop.f32.mrb[0].mxu1 }
 0x431   :  { %v414_v8 = vadd.f32 %v706_v6, %v413_v7  ;;  %v765_v9 = vpop.f32.mrb[1].mxu1 }
 0x432   :  { %v416_v10 = vpop.f32.mrb[2].mxu1 }
 0x433   :  { %v422_v11 = vmul.f32 0.70710677, %v414_v8  ;;  %v417_v12 = vadd.f32 %v706_v6, %v416_v10  ;;  %v766_v13 = vpop.f32.mrb[3].mxu1  ;;  %v420_v16 = vmul.f32 0.5, %v414_v8 }
 0x435   :  { %818 = verf.f32 %v422_v11  ;;  %v423_v14 = vmul.f32 0.70710677, %v417_v12  ;;  %v421_v19 = vmul.f32 0.5, %v417_v12 }
 0x437   :  { %820 = verf.f32 %v423_v14 }
 0x43f   :  { %v819_v15 = vpop.eup %818 }
 0x440   :  { %v426_v17 = vadd.f32 1.0, %v819_v15 }
 0x441   :  { %v821_v18 = vpop.eup %820 }
 0x442   :  { %v428_v20 = vmul.f32 %v426_v17, %v420_v16  ;;  %v427_v21 = vadd.f32 1.0, %v821_v18 }
 0x444   :  { %v432_v22 = vsel %vm252_vm11, %v428_v20, 0.0  ;;  %v429_v23 = vmul.f32 %v427_v21, %v421_v19  ;;  %v809_v21 = vld [vmem:[%s1348_s14 + $0x8] sm:$0xff]  }
 0x445   :  { %433 = vadd.xlane.f32.xlu1 %v432_v22 }
 0x446   :  { %v435_v24 = vsel %vm252_vm11, %v429_v23, 0.0 }
 0x449   :  { %436 = vadd.xlane.f32.xlu1 %v435_v24 }
 0x4d2   :  { %v434_v25 = vpop.xlane.xlu1 %433 }
 0x4d3   :  { %v438_v26 = vmul.f32 0.03125, %v434_v25 }
 0x4d5   :  { %v440_v27 = vsub.f32 %v428_v20, %v438_v26  ;;  %v808_v20 = vld [vmem:[%s1348_s14] sm:$0xff]  }
 0x4d6   :  { %v437_v28 = vpop.xlane.xlu1 %436  ;;  %776 = vmatpush3.bf16.msra.mxu0 %v808_v20 }
 0x4d7   :  { %v439_v29 = vmul.f32 0.03125, %v437_v28  ;;  %v442_v30 = vmul.f32 %v440_v27, %v440_v27  ;;  %777 = vmatprep.subr.bf16.mxu0 %v1055_v1 }
 0x4d9   :  { %v441_v31 = vsub.f32 %v429_v23, %v439_v29  ;;  %v444_v32 = vsel %vm252_vm11, %v442_v30, 0.0  ;;  %v716_v30 = vld [vmem:[#allocation14] ss:$0 sm:$0xff] }
 0x4da   :  { %445 = vadd.xlane.f32.xlu1 %v444_v32  ;;  %778 = vmatpush3.bf16.msra.mxu0 %v809_v21 }
 0x4db   :  { %v443_v33 = vmul.f32 %v441_v31, %v441_v31 }
 0x4dd   :  { %v447_v34 = vsel %vm252_vm11, %v443_v33, 0.0 }
 0x4de   :  { %448 = vadd.xlane.f32.xlu1 %v447_v34  ;;  %v717_v34 = vld [vmem:[#allocation15] ss:$0 sm:$0xff] }
 0x567   :  { %v446_v37 = vpop.xlane.xlu1 %445 }
 0x568   :  { %v450_v38 = vmul.f32 0.03125, %v446_v37 }
 0x56a   :  { %v452_v39 = vadd.f32 1e-12, %v450_v38 }
 0x56b   :  { %v449_v40 = vpop.xlane.xlu1 %448 }
 0x56c   :  { %822 = vrsqrt.f32 %v452_v39  ;;  %v451_v41 = vmul.f32 0.03125, %v449_v40  ;;  %v718_v39 = vld [vmem:[%s1349_s15] ss:$0 sm:$0xff] }
 0x56e   :  { %v453_v42 = vadd.f32 1e-12, %v451_v41 }
 0x570   :  { %824 = vrsqrt.f32 %v453_v42 }
 0x576   :  { %v823_v43 = vpop.eup %822 }
 0x577   :  { %v456_v44 = vmul.f32 %v823_v43, %v440_v27 }
 0x579   :  { %v464_v47 = vmul.f32 %v710_v45, %v456_v44 }
 0x57a   :  { %v825_v46 = vpop.eup %824 }
 0x57b   :  { %v457_v48 = vmul.f32 %v825_v46, %v441_v31  ;;  %v472_v51 = vadd.f32 %v711_v49, %v464_v47 }
 0x57d   :  { %v465_v50 = vmul.f32 %v710_v45, %v457_v48 }
 0x57f   :  { %v473_v52 = vadd.f32 %v711_v49, %v465_v50 }
 0x581   :  { %v474_v53 = vpack.c.bf16 %v473_v52, %v472_v51 }
 0x583   :  { %772 = vmatmul.mubr.msk.bf16.vlgmr.msra.gmra.mrb[4].mxu1 %vm252_vm11, %v474_v53 }
 0x656   :  { %v535_v55 = vpop.f32.mrb[4].mxu1 }
 0x657   :  { %v536_v56 = vadd.f32 %v712_v54, %v535_v55  ;;  %v773_v57 = vpop.f32.mrb[5].mxu1 }
 0x658   :  { %v538_v58 = vpop.f32.mrb[6].mxu1 }
 0x659   :  { %v544_v59 = vmul.f32 0.70710677, %v536_v56  ;;  %v539_v60 = vadd.f32 %v712_v54, %v538_v58  ;;  %v774_v61 = vpop.f32.mrb[7].mxu1  ;;  %v542_v0 = vmul.f32 0.5, %v536_v56 }
 0x65b   :  { %826 = verf.f32 %v544_v59  ;;  %v545_v62 = vmul.f32 0.70710677, %v539_v60  ;;  %v543_v4 = vmul.f32 0.5, %v539_v60 }
 0x65d   :  { %828 = verf.f32 %v545_v62 }
 0x665   :  { %v827_v63 = vpop.eup %826 }
 0x666   :  { %v548_v2 = vadd.f32 1.0, %v827_v63 }
 0x667   :  { %v829_v3 = vpop.eup %828 }
 0x668   :  { %v550_v5 = vmul.f32 %v548_v2, %v542_v0  ;;  %v549_v6 = vadd.f32 1.0, %v829_v3 }
 0x66a   :  { %v554_v7 = vsel %vm252_vm11, %v550_v5, 0.0  ;;  %v551_v8 = vmul.f32 %v549_v6, %v543_v4 }
 0x66b   :  { %555 = vadd.xlane.f32.xlu1 %v554_v7 }
 0x66c   :  { %v557_v9 = vsel %vm252_vm11, %v551_v8, 0.0 }
 0x66f   :  { %558 = vadd.xlane.f32.xlu1 %v557_v9 }
 0x6f8   :  { %v556_v10 = vpop.xlane.xlu1 %555 }
 0x6f9   :  { %v560_v11 = vmul.f32 0.03125, %v556_v10 }
 0x6fb   :  { %v562_v12 = vsub.f32 %v550_v5, %v560_v11 }
 0x6fc   :  { %v559_v13 = vpop.xlane.xlu1 %558 }
 0x6fd   :  { %v561_v14 = vmul.f32 0.03125, %v559_v13  ;;  %v564_v15 = vmul.f32 %v562_v12, %v562_v12 }
 0x6ff   :  { %v563_v16 = vsub.f32 %v551_v8, %v561_v14  ;;  %v566_v17 = vsel %vm252_vm11, %v564_v15, 0.0 }
 0x700   :  { %567 = vadd.xlane.f32.xlu1 %v566_v17 }
 0x701   :  { %v565_v18 = vmul.f32 %v563_v16, %v563_v16 }
 0x703   :  { %v569_v19 = vsel %vm252_vm11, %v565_v18, 0.0 }
 0x704   :  { %570 = vadd.xlane.f32.xlu0 %v569_v19 }
 0x78d   :  { %v568_v22 = vpop.xlane.xlu1 %567 }
 0x78e   :  { %v572_v23 = vmul.f32 0.03125, %v568_v22 }
 0x790   :  { %v574_v24 = vadd.f32 1e-12, %v572_v23 }
 0x791   :  { %v571_v25 = vpop.xlane.xlu0 %570 }
 0x792   :  { %830 = vrsqrt.f32 %v574_v24  ;;  %v573_v26 = vmul.f32 0.03125, %v571_v25 }
 0x794   :  { %v575_v27 = vadd.f32 1e-12, %v573_v26 }
 0x796   :  { %832 = vrsqrt.f32 %v575_v27 }
 0x79c   :  { %v831_v28 = vpop.eup %830 }
 0x79d   :  { %v578_v29 = vmul.f32 %v831_v28, %v562_v12 }
 0x79f   :  { %v586_v32 = vmul.f32 %v716_v30, %v578_v29 }
 0x7a0   :  { %v833_v31 = vpop.eup %832 }
 0x7a1   :  { %v579_v33 = vmul.f32 %v833_v31, %v563_v16  ;;  %v594_v36 = vadd.f32 %v717_v34, %v586_v32 }
 0x7a3   :  { %v587_v35 = vmul.f32 %v716_v30, %v579_v33 }
 0x7a5   :  { %v595_v37 = vadd.f32 %v717_v34, %v587_v35 }
 0x7a7   :  { %v596_v1 = vpack.c.bf16 %v595_v37, %v594_v36 }
 0x7a9   :  { %597 = vst.msk [vmem:[#allocation2] sm:$0xff] %vm252_vm11, %v596_v1 }
 0x7b0   :  { %v598_v38 = vld [vmem:[#allocation2] sm:$0xff] }
 0x7b1   :  { %780 = vmatmul.mubr.msk.bf16.vlgmr.msra.gmra.mrb[4].mxu0 %vm252_vm11, %v598_v38 }
 0x884   :  { %v660_v40 = vpop.f32.mrb[4].mxu0 }
 0x885   :  { %v781_v41 = vpop.f32.mrb[5].mxu0  ;;  %v661_v43 = vadd.f32 %v718_v39, %v660_v40 }
 0x886   :  { %v663_v42 = vpop.f32.mrb[6].mxu0 }
 0x887   :  { %v664_v44 = vadd.f32 %v718_v39, %v663_v42  ;;  %v782_v45 = vpop.f32.mrb[7].mxu0 }
 0x889   :  { %v729_v46 = vpack.c.bf16 %v664_v44, %v661_v43 }
 0x88b   :  { %730 = vst [vmem:[#allocation17] sm:$0xff] %v729_v46  }
 0x88c   :  { %1021 = shalt.err (!%p1018_p12)
}
 0x88d   :  { %s1356_s28 = sld [smem:[#allocation25_spill]] }
 0x893   :  { %s1022_s24 = scalar_lea.hbm %s1356_s28, 128 }
 0x894   :  { %p1023_p13 = scmp.ne.s32.totalorder %s1356_s28, %s1022_s24  ;;  %p1026_p0 = scmp.lt.u32.totalorder %s1022_s24, %s1356_s28 }
 0x896   :  { %p1028_p1 = pnand %p1026_p0, %p1023_p13 }
 0x898   :  { %1031 = shalt.err (!%p1028_p1)
}
 0x899   :  { %688 = dma.vmem_to_hbm [thread:$0]  %s683_s22, 128, %s1356_s28, [#allocation5], %s1045_s0, %s1045_s0, %s1046_s17  }
 0x89a   :  { %1042 = dma.done.wait [#allocation5], 128  }
 0x89b   :  { %1043 = vsyncadd [#allocation5], 4294967168 }
 0x89c   :  { %692 = vsyncpa [#allocation4], 1 }
 0x89d   :  { %693 = vsyncpa [#allocation7], 1 }
 0x89e   :  { %694 = vsyncpa [#allocation10], 1 }
 0x89f   :  { %695 = vsyncpa [#allocation13], 1 }
 0x8a0   :  { %696 = vsyncpa [#allocation16], 1 }
 0x8a1   :  { %697 = vsyncpa [#allocation5], 1 }

// kernel: tpu_custom_call.1
= control target key start
LH: loop header
LB: loop body
LE: loop exit
PB: predicated region body
PF: predicated region fallthrough
CT: control target
= control target key end

     0   :  { %s1334_s0 = inlined_call_operand.vmem [shape: s32[16,1], index: 0, kind: input, shape index: {}]   ;;  %s1335_s1 = inlined_call_operand.vmem [shape: f32[16,32], index: 1, kind: input, shape index: {}]   ;;  %s1336_s2 = inlined_call_operand.hbm [shape: bf16[4,32], index: 2, kind: input, shape index: {}]   ;;  %s1337_s3 = inlined_call_operand.hbm [shape: bf16[32,32], index: 3, kind: input, shape index: {}]   ;;  %s1338_s4 = inlined_call_operand.hbm [shape: f32[1,32], index: 4, kind: input, shape index: {}]   ;;  %s1339_s5 = inlined_call_operand.vmem [shape: f32[1,32], index: 5, kind: input, shape index: {}]   ;;  %s1340_s6 = inlined_call_operand.vmem [shape: bf16[32,32], index: 6, kind: input, shape index: {}]   ;;  %s1341_s7 = inlined_call_operand.vmem [shape: f32[1,32], index: 7, kind: input, shape index: {}]   ;;  %s1342_s8 = inlined_call_operand.hbm [shape: f32[1,32], index: 8, kind: input, shape index: {}]   ;;  %s1343_s9 = inlined_call_operand.hbm [shape: f32[1,32], index: 9, kind: input, shape index: {}]   ;;  %s1344_s10 = inlined_call_operand.vmem [shape: bf16[32,32], index: 10, kind: input, shape index: {}]   ;;  %s1345_s11 = inlined_call_operand.hbm [shape: f32[1,32], index: 11, kind: input, shape index: {}]   ;;  %s1346_s12 = inlined_call_operand.hbm [shape: f32[1,32], index: 12, kind: input, shape index: {}]   ;;  %s1347_s13 = inlined_call_operand.hbm [shape: f32[1,32], index: 13, kind: input, shape index: {}]   ;;  %s1348_s14 = inlined_call_operand.vmem [shape: bf16[32,128], index: 14, kind: input, shape index: {}]   ;;  %s1349_s15 = inlined_call_operand.vmem [shape: f32[1,128], index: 15, kind: input, shape index: {}]   ;;  %s1350_s16 = inlined_call_operand.hbm [shape: bf16[16,128], index: 16, kind: output, shape index: {}]  }
   0x1   :  { %1353 = sst [smem:[#allocation24_spill]] %s1334_s0 }
   0x2   :  { %1354 = sst [smem:[#allocation25_spill]] %s1350_s16 }
   0x3   :  { %21 = vsyncpa [#allocation4], 0 }
   0x4   :  { %22 = vsyncpa [#allocation7], 0 }
   0x5   :  { %23 = vsyncpa [#allocation10], 0 }
   0x6   :  { %24 = vsyncpa [#allocation13], 0 }
   0x7   :  { %25 = vsyncpa [#allocation16], 0 }
   0x8   :  { %26 = vsyncpa [#allocation5], 0  ;;  %s1044_s21 = smov [#allocation6]   ;;  %s834_s25 = scalar_lea.hbm %s1337_s3, 256 }
   0x9   :  { %s46_s22 = sshll.u32 %s1044_s21, 4  ;;  %p835_p0 = scmp.ne.s32.totalorder %s1337_s3, %s834_s25  ;;  %s47_s22 = int_to_ptr.vmem [resolvable:$true] %s46_s22 }
   0xa   :  { %p838_p1 = scmp.lt.u32.totalorder %s834_s25, %s1337_s3 }
   0xc   :  { %p840_p2 = pnand %p838_p1, %p835_p0 }
   0xe   :  { %843 = shalt.err (!%p840_p2)
}
   0xf   :  { %s844_s30 = scalar_lea.vmem %s47_s22, 256  ;;  %p849_p4 = scmp.lt.s32.totalorder %s47_s22, %s47_s22 }
  0x10   :  { %p845_p3 = scmp.ne.s32.totalorder %s47_s22, %s844_s30  ;;  %p850_p5 = scmp.lt.s32.totalorder %s844_s30, %s844_s30 }
  0x12   :  { %p851_p6 = por %p850_p5, %p849_p4 }
  0x14   :  { %p852_p7 = pnand %p851_p6, %p845_p3 }
  0x16   :  { %855 = shalt.err (!%p852_p7)
}
  0x17   :  { %s1045_s0 = smov 64   ;;  %s1046_s17 = smov 4  }
  0x18   :  { %52 = dma.hbm_to_vmem [thread:$0]  %s1337_s3, 256, %s47_s22, [#allocation7], %s1045_s0, %s1045_s0, %s1046_s17  }
  0x19   :  { %s1047_s20 = smov [#allocation9]   ;;  %s1048_s23 = smov [#allocation12]  }
  0x1a   :  { %s75_s21 = sshll.u32 %s1047_s20, 4  ;;  %s97_s24 = sshll.u32 %s1048_s23, 4  ;;  %s76_s21 = int_to_ptr.vmem [resolvable:$true] %s75_s21  ;;  %s98_s24 = int_to_ptr.vmem [resolvable:$true] %s97_s24 }
  0x1b   :  { %s856_s27 = scalar_lea.hbm %s1342_s8, 16 }
  0x1c   :  { %p857_p8 = scmp.ne.s32.totalorder %s1342_s8, %s856_s27  ;;  %p860_p9 = scmp.lt.u32.totalorder %s856_s27, %s1342_s8 }
  0x1e   :  { %p862_p10 = pnand %p860_p9, %p857_p8 }
  0x20   :  { %865 = shalt.err (!%p862_p10)
}
  0x21   :  { %s866_s3 = scalar_lea.vmem %s76_s21, 16  ;;  %s870_s22 = scalar_lea.vmem %s76_s21, 32 }
  0x22   :  { %p867_p11 = scmp.ne.s32.totalorder %s76_s21, %s866_s3  ;;  %p871_p12 = scmp.lt.s32.totalorder %s76_s21, %s76_s21 }
  0x23   :  { %p872_p13 = scmp.lt.s32.totalorder %s870_s22, %s866_s3 }
  0x25   :  { %p873_p0 = por %p872_p13, %p871_p12 }
  0x27   :  { %p874_p1 = pnand %p873_p0, %p867_p11 }
  0x29   :  { %877 = shalt.err (!%p874_p1)
}
  0x2a   :  { %78 = dma.hbm_to_vmem [thread:$0]  %s1342_s8, 16, %s76_s21, [#allocation10]  }
  0x2b   :  { %s878_s16 = scalar_lea.hbm %s1345_s11, 16 }
  0x2c   :  { %p879_p2 = scmp.ne.s32.totalorder %s1345_s11, %s878_s16  ;;  %p882_p3 = scmp.lt.u32.totalorder %s878_s16, %s1345_s11 }
  0x2e   :  { %p884_p4 = pnand %p882_p3, %p879_p2 }
  0x30   :  { %887 = shalt.err (!%p884_p4)
}
  0x31   :  { %s888_s29 = scalar_lea.vmem %s98_s24, 16  ;;  %s892_s30 = scalar_lea.vmem %s98_s24, 32 }
  0x32   :  { %p889_p5 = scmp.ne.s32.totalorder %s98_s24, %s888_s29  ;;  %p893_p6 = scmp.lt.s32.totalorder %s98_s24, %s98_s24 }
  0x33   :  { %p894_p7 = scmp.lt.s32.totalorder %s892_s30, %s888_s29 }
  0x35   :  { %p895_p8 = por %p894_p7, %p893_p6 }
  0x37   :  { %p896_p9 = pnand %p895_p8, %p889_p5 }
  0x39   :  { %899 = shalt.err (!%p896_p9)
}
  0x3a   :  { %100 = dma.hbm_to_vmem [thread:$0]  %s1345_s11, 16, %s98_s24, [#allocation13]  }
  0x3b   :  { %s1049_s3 = smov [#allocation3]   ;;  %s1050_s18 = smov [#allocation8]  }
  0x3c   :  { %s37_s22 = sshll.u32 %s1049_s3, 4  ;;  %s59_s19 = sshll.u32 %s1050_s18, 4  ;;  %s38_s22 = int_to_ptr.vmem [resolvable:$true] %s37_s22  ;;  %s60_s19 = int_to_ptr.vmem [resolvable:$true] %s59_s19 }
  0x3d   :  { %s900_s16 = scalar_lea.hbm %s1336_s2, 32 }
  0x3e   :  { %p901_p10 = scmp.ne.s32.totalorder %s1336_s2, %s900_s16  ;;  %p904_p11 = scmp.lt.u32.totalorder %s900_s16, %s1336_s2 }
  0x40   :  { %p906_p12 = pnand %p904_p11, %p901_p10 }
  0x42   :  { %909 = shalt.err (!%p906_p12)
}
  0x43   :  { %s910_s11 = scalar_lea.vmem %s38_s22, 32  ;;  %p915_p0 = scmp.lt.s32.totalorder %s38_s22, %s38_s22 }
  0x44   :  { %p911_p13 = scmp.ne.s32.totalorder %s38_s22, %s910_s11  ;;  %p916_p1 = scmp.lt.s32.totalorder %s910_s11, %s910_s11 }
  0x46   :  { %p917_p2 = por %p916_p1, %p915_p0 }
  0x48   :  { %p918_p3 = pnand %p917_p2, %p911_p13 }
  0x4a   :  { %921 = shalt.err (!%p918_p3)
}
  0x4b   :  { %40 = dma.hbm_to_vmem [thread:$0]  %s1336_s2, 32, %s38_s22, [#allocation4]  }
  0x4c   :  { %s922_s21 = scalar_lea.hbm %s1338_s4, 16 }
  0x4d   :  { %p923_p4 = scmp.ne.s32.totalorder %s1338_s4, %s922_s21  ;;  %p926_p5 = scmp.lt.u32.totalorder %s922_s21, %s1338_s4 }
  0x4f   :  { %p928_p6 = pnand %p926_p5, %p923_p4 }
  0x51   :  { %931 = shalt.err (!%p928_p6)
}
  0x52   :  { %s932_s16 = scalar_lea.vmem %s60_s19, 16  ;;  %s936_s25 = scalar_lea.vmem %s60_s19, 32 }
  0x53   :  { %p933_p7 = scmp.ne.s32.totalorder %s60_s19, %s932_s16  ;;  %p937_p8 = scmp.lt.s32.totalorder %s60_s19, %s60_s19 }
  0x54   :  { %p938_p9 = scmp.lt.s32.totalorder %s936_s25, %s932_s16 }
  0x56   :  { %p939_p10 = por %p938_p9, %p937_p8 }
  0x58   :  { %p940_p11 = pnand %p939_p10, %p933_p7 }
  0x5a   :  { %943 = shalt.err (!%p940_p11)
}
  0x5b   :  { %62 = dma.hbm_to_vmem [thread:$0]  %s1338_s4, 16, %s60_s19, [#allocation7]  }
  0x5c   :  { %s1051_s26 = smov [#allocation11]   ;;  %s1052_s28 = smov [#allocation14]  }
  0x5d   :  { %s85_s27 = sshll.u32 %s1051_s26, 4  ;;  %s107_s11 = sshll.u32 %s1052_s28, 4  ;;  %s86_s27 = int_to_ptr.vmem [resolvable:$true] %s85_s27  ;;  %s108_s11 = int_to_ptr.vmem [resolvable:$true] %s107_s11 }
  0x5e   :  { %s944_s30 = scalar_lea.hbm %s1343_s9, 16 }
  0x5f   :  { %p945_p12 = scmp.ne.s32.totalorder %s1343_s9, %s944_s30  ;;  %p948_p13 = scmp.lt.u32.totalorder %s944_s30, %s1343_s9 }
  0x61   :  { %p950_p0 = pnand %p948_p13, %p945_p12 }
  0x63   :  { %953 = shalt.err (!%p950_p0)
}
  0x64   :  { %s954_s4 = scalar_lea.vmem %s86_s27, 16  ;;  %s958_s19 = scalar_lea.vmem %s86_s27, 32 }
  0x65   :  { %p955_p1 = scmp.ne.s32.totalorder %s86_s27, %s954_s4  ;;  %p959_p2 = scmp.lt.s32.totalorder %s86_s27, %s86_s27 }
  0x66   :  { %p960_p3 = scmp.lt.s32.totalorder %s958_s19, %s954_s4 }
  0x68   :  { %p961_p4 = por %p960_p3, %p959_p2 }
  0x6a   :  { %p962_p5 = pnand %p961_p4, %p955_p1 }
  0x6c   :  { %965 = shalt.err (!%p962_p5)
}
  0x6d   :  { %88 = dma.hbm_to_vmem [thread:$0]  %s1343_s9, 16, %s86_s27, [#allocation10]  }
  0x6e   :  { %s966_s2 = scalar_lea.hbm %s1346_s12, 16 }
  0x6f   :  { %p967_p6 = scmp.ne.s32.totalorder %s1346_s12, %s966_s2  ;;  %p970_p7 = scmp.lt.u32.totalorder %s966_s2, %s1346_s12 }
  0x71   :  { %p972_p8 = pnand %p970_p7, %p967_p6 }
  0x73   :  { %975 = shalt.err (!%p972_p8)
}
  0x74   :  { %s976_s29 = scalar_lea.vmem %s108_s11, 16  ;;  %s980_s30 = scalar_lea.vmem %s108_s11, 32 }
  0x75   :  { %p977_p9 = scmp.ne.s32.totalorder %s108_s11, %s976_s29  ;;  %p981_p10 = scmp.lt.s32.totalorder %s108_s11, %s108_s11 }
  0x76   :  { %p982_p11 = scmp.lt.s32.totalorder %s980_s30, %s976_s29 }
  0x78   :  { %p983_p12 = por %p982_p11, %p981_p10 }
  0x7a   :  { %p984_p13 = pnand %p983_p12, %p977_p9 }
  0x7c   :  { %987 = shalt.err (!%p984_p13)
}
  0x7d   :  { %110 = dma.hbm_to_vmem [thread:$0]  %s1346_s12, 16, %s108_s11, [#allocation13]  }
  0x7e   :  { %s1053_s8 = smov [#allocation15]   ;;  %s988_s4 = scalar_lea.hbm %s1347_s13, 16 }
  0x7f   :  { %s117_s21 = sshll.u32 %s1053_s8, 4  ;;  %p989_p0 = scmp.ne.s32.totalorder %s1347_s13, %s988_s4  ;;  %s118_s21 = int_to_ptr.vmem [resolvable:$true] %s117_s21 }
  0x80   :  { %p992_p1 = scmp.lt.u32.totalorder %s988_s4, %s1347_s13 }
  0x82   :  { %p994_p2 = pnand %p992_p1, %p989_p0 }
  0x84   :  { %997 = shalt.err (!%p994_p2)
}
  0x85   :  { %s998_s25 = scalar_lea.vmem %s118_s21, 16  ;;  %s1002_s12 = scalar_lea.vmem %s118_s21, 32 }
  0x86   :  { %p999_p3 = scmp.ne.s32.totalorder %s118_s21, %s998_s25  ;;  %p1003_p4 = scmp.lt.s32.totalorder %s118_s21, %s118_s21 }
  0x87   :  { %p1004_p5 = scmp.lt.s32.totalorder %s1002_s12, %s998_s25 }
  0x89   :  { %p1005_p6 = por %p1004_p5, %p1003_p4 }
  0x8b   :  { %p1006_p7 = pnand %p1005_p6, %p999_p3 }
  0x8d   :  { %1009 = shalt.err (!%p1006_p7)
}
  0x8e   :  { %120 = dma.hbm_to_vmem [thread:$0]  %s1347_s13, 16, %s118_s21, [#allocation16]  }
  0x8f   :  { %1032 = dma.done.wait [#allocation4], 32  }
  0x90   :  { %1033 = vsyncadd [#allocation4], 4294967264 }
  0x91   :  { %1034 = dma.done.wait [#allocation7], 272  }
  0x92   :  { %1035 = vsyncadd [#allocation7], 4294967024 }
  0x93   :  { %1036 = dma.done.wait [#allocation10], 32  }
  0x94   :  { %1037 = vsyncadd [#allocation10], 4294967264 }
  0x95   :  { %1038 = dma.done.wait [#allocation13], 32  }
  0x96   :  { %1039 = vsyncadd [#allocation13], 4294967264 }
  0x97   :  { %1040 = dma.done.wait [#allocation16], 16  }
  0x98   :  { %1041 = vsyncadd [#allocation16], 4294967280  ;;  %v1054_v0 = vmov 0   ;;  %v1055_v1 = vmov 0.0   ;;  %s1355_s13 = sld [smem:[#allocation24_spill]]  ;;  %vm188_vm6 = vcmask 1041408   ;;  %v168_v12 = vlaneseq }
  0x99   :  { %801 = vset.pattern.permute.xlu0 %v1054_v0  ;;  %745 = vmatprep.subr.bf16.mxu0 %v1055_v1  ;;  %v183_v10 = vld [vmem:[#allocation3] sm:$0x3]  ;;  %vm1056_vm7 = vmmov 0   ;;  %vm184_vm10 = vcmask 31744   ;;  %v802_v18 = vld [vmem:[#allocation6] sm:$0xff]   ;;  %v803_v20 = vld [vmem:[#allocation6 + $0x8] sm:$0xff]  }
  0x9a   :  { %759 = vmatprep.subr.bf16.mxu1 %v1055_v1  ;;  %v190_v11 = vsel %vm188_vm6, %v183_v10, 0  ;;  %747 = vmatprep.mubr.msk.bf16.mxu0 %vm1056_vm7, %v1055_v1  ;;  %v169_v13 = vand.u32 127, %v168_v12  ;;  %v233_v21 = vld [vmem:[%s1335_s1] sm:$0xff]  ;;  %v234_v22 = vld [vmem:[%s1335_s1 + $0x8] sm:$0xff]  ;;  %vm252_vm11 = vcmask 261120   ;;  %s1057_s2 = smov [#allocation17]  }
  0x9b   :  { %746 = vmatpush3.bf16.msra.mxu0 %v190_v11  ;;  %763 = vmatprep.mubr.msk.bf16.mxu1 %vm1056_vm7, %v1055_v1  ;;  %v235_v23 = vpack.c.bf16 %v234_v22, %v233_v21  ;;  %v804_v50 = vld [vmem:[%s1340_s6] sm:$0xff]   ;;  %v805_v51 = vld [vmem:[%s1340_s6 + $0x8] sm:$0xff]   ;;  %v704_v60 = vld [vmem:[#allocation8] ss:$0 sm:$0xff]  ;;  %s682_s22 = sshll.u32 %s1057_s2, 4  ;;  %s683_s22 = int_to_ptr.vmem [resolvable:$true] %s682_s22 }
  0x9c   :  { %751 = vmatprep.subr.bf16.mxu0 %v1055_v1  ;;  %760 = vmatpush3.bf16.msra.mxu1 %v804_v50  ;;  %v705_v0 = vld [vmem:[%s1339_s5] ss:$0 sm:$0xff]  ;;  %s1010_s26 = scalar_lea.vmem %s683_s22, 128  ;;  %p1015_p9 = scmp.lt.s32.totalorder %s683_s22, %s683_s22 }
  0x9d   :  { %761 = vmatprep.subr.bf16.mxu1 %v1055_v1  ;;  %p1011_p8 = scmp.ne.s32.totalorder %s683_s22, %s1010_s26  ;;  %p1016_p10 = scmp.lt.s32.totalorder %s1010_s26, %s1010_s26 }
  0x9e   :  { %v154_v2 = vld [vmem:[%s1355_s13] sm:$0xff]  ;;  %v155_v3 = vld [vmem:[%s1355_s13 + $0x8] sm:$0xff] }
  0x9f   :  { %vm156_vm0 = vcmp.eq.s32.totalorder %v154_v2, 4294967196  ;;  %vm157_vm1 = vcmp.eq.s32.totalorder %v155_v3, 4294967196  ;;  %p1017_p11 = por %p1016_p10, %p1015_p9 }
  0xa0   :  { %v158_v4 = vsel %vm156_vm0, 0, %v154_v2  ;;  %v159_v5 = vsel %vm157_vm1, 0, %v155_v3  ;;  %762 = vmatpush3.bf16.msra.mxu1 %v805_v51 }
  0xa1   :  { %vm160_vm2 = vcmp.gt.s32.totalorder %v158_v4, 0  ;;  %vm162_vm3 = vcmp.gt.s32.totalorder %v159_v5, 0  ;;  %767 = vmatprep.subr.bf16.mxu1 %v1055_v1  ;;  %p1018_p12 = pnand %p1017_p11, %p1011_p8 }
  0xa2   :  { %v161_v6 = vsel %vm160_vm2, %v158_v4, 0  ;;  %v163_v7 = vsel %vm162_vm3, %v159_v5, 0 }
  0xa3   :  { %vm164_vm4 = vcmp.lt.s32.totalorder %v161_v6, 3  ;;  %vm166_vm5 = vcmp.lt.s32.totalorder %v163_v7, 3 }
  0xa4   :  { %v165_v8 = vsel %vm164_vm4, %v161_v6, 3  ;;  %v167_v9 = vsel %vm166_vm5, %v163_v7, 3  ;;  %v706_v6 = vld [vmem:[%s1341_s7] ss:$0 sm:$0xff] }
  0xa5   :  { %171 = vperm.xlu0 %801, %v165_v8  }
  0xa9   :  { %174 = vperm.xlu0 %801, %v167_v9  }
 0x124   :  { %v172_v14 = vpop.permute.xlu0 %171 }
 0x125   :  { %vm176_vm8 = vcmp.eq.s32.totalorder %v169_v13, %v172_v14 }
 0x126   :  { %v698_v16 = vsel %vm176_vm8, 1.0, %v1055_v1 }
 0x128   :  { %v175_v15 = vpop.permute.xlu0 %174 }
 0x129   :  { %vm177_vm9 = vcmp.eq.s32.totalorder %v169_v13, %v175_v15 }
 0x12a   :  { %v699_v17 = vsel %vm177_vm9, 1.0, %v1055_v1 }
 0x12b   :  { %v182_v19 = vpack.c.bf16 %v699_v17, %v698_v16 }
 0x12d   :  { %748 = vmatmul.mubr.msk.bf16.vlgmr.msra.gmra.mrb[0].mxu0 %vm184_vm10, %v182_v19 }
 0x12e   :  { %752 = vmatpush3.bf16.msra.mxu0 %v802_v18  ;;  %755 = vmatprep.mubr.msk.bf16.mxu0 %vm1056_vm7, %v1055_v1 }
 0x12f   :  { %753 = vmatprep.subr.bf16.mxu0 %v1055_v1 }
 0x132   :  { %754 = vmatpush3.bf16.msra.mxu0 %v803_v20 }
 0x133   :  { %775 = vmatprep.subr.bf16.mxu0 %v1055_v1 }
 0x139   :  { %756 = vmatmul.mubr.msk.bf16.vlgmr.msra.gmra.mrb[0].mxu0 %vm252_vm11, %v235_v23 }
 0x13a   :  { %779 = vmatprep.mubr.msk.bf16.mxu0 %vm1056_vm7, %v1055_v1 }
 0x20c   :  { %v290_v24 = vpop.f32.mrb[0].mxu0 }
 0x20d   :  { %v299_v25 = vmul.f32 0.70710677, %v290_v24  ;;  %v757_v26 = vpop.f32.mrb[1].mxu0  ;;  %v297_v31 = vmul.f32 0.5, %v290_v24 }
 0x20e   :  { %v293_v27 = vpop.f32.mrb[2].mxu0 }
 0x20f   :  { %810 = verf.f32 %v299_v25  ;;  %v300_v28 = vmul.f32 0.70710677, %v293_v27  ;;  %v758_v29 = vpop.f32.mrb[3].mxu0  ;;  %v298_v34 = vmul.f32 0.5, %v293_v27 }
 0x211   :  { %812 = verf.f32 %v300_v28 }
 0x219   :  { %v811_v30 = vpop.eup %810 }
 0x21a   :  { %v303_v32 = vadd.f32 1.0, %v811_v30 }
 0x21b   :  { %v813_v33 = vpop.eup %812 }
 0x21c   :  { %v305_v35 = vmul.f32 %v303_v32, %v297_v31  ;;  %v304_v36 = vadd.f32 1.0, %v813_v33 }
 0x21e   :  { %v309_v37 = vsel %vm252_vm11, %v305_v35, 0.0  ;;  %v306_v38 = vmul.f32 %v304_v36, %v298_v34  ;;  %v807_v36 = vld [vmem:[%s1344_s10 + $0x8] sm:$0xff]  }
 0x21f   :  { %310 = vadd.xlane.f32.xlu1 %v309_v37 }
 0x220   :  { %v312_v39 = vsel %vm252_vm11, %v306_v38, 0.0 }
 0x223   :  { %313 = vadd.xlane.f32.xlu1 %v312_v39 }
 0x2ac   :  { %v311_v40 = vpop.xlane.xlu1 %310 }
 0x2ad   :  { %v316_v41 = vmul.f32 0.03125, %v311_v40 }
 0x2af   :  { %v318_v42 = vsub.f32 %v305_v35, %v316_v41  ;;  %v806_v35 = vld [vmem:[%s1344_s10] sm:$0xff]  }
 0x2b0   :  { %v314_v43 = vpop.xlane.xlu1 %313 }
 0x2b1   :  { %v317_v44 = vmul.f32 0.03125, %v314_v43  ;;  %v320_v45 = vmul.f32 %v318_v42, %v318_v42 }
 0x2b3   :  { %v319_v46 = vsub.f32 %v306_v38, %v317_v44  ;;  %v322_v47 = vsel %vm252_vm11, %v320_v45, 0.0  ;;  %v710_v45 = vld [vmem:[#allocation9] ss:$0 sm:$0xff] }
 0x2b4   :  { %323 = vadd.xlane.f32.xlu0 %v322_v47 }
 0x2b5   :  { %v321_v48 = vmul.f32 %v319_v46, %v319_v46 }
 0x2b7   :  { %v325_v49 = vsel %vm252_vm11, %v321_v48, 0.0 }
 0x2b8   :  { %326 = vadd.xlane.f32.xlu1 %v325_v49  ;;  %v711_v49 = vld [vmem:[#allocation11] ss:$0 sm:$0xff] }
 0x341   :  { %v324_v52 = vpop.xlane.xlu0 %323 }
 0x342   :  { %v328_v53 = vmul.f32 0.03125, %v324_v52 }
 0x344   :  { %v330_v54 = vadd.f32 1e-12, %v328_v53 }
 0x345   :  { %v327_v55 = vpop.xlane.xlu1 %326 }
 0x346   :  { %814 = vrsqrt.f32 %v330_v54  ;;  %v329_v56 = vmul.f32 0.03125, %v327_v55  ;;  %v712_v54 = vld [vmem:[#allocation12] ss:$0 sm:$0xff] }
 0x348   :  { %v331_v57 = vadd.f32 1e-12, %v329_v56 }
 0x34a   :  { %816 = vrsqrt.f32 %v331_v57 }
 0x350   :  { %v815_v58 = vpop.eup %814 }
 0x351   :  { %v334_v59 = vmul.f32 %v815_v58, %v318_v42 }
 0x353   :  { %v342_v63 = vmul.f32 %v704_v60, %v334_v59 }
 0x354   :  { %v817_v61 = vpop.eup %816 }
 0x355   :  { %v335_v62 = vmul.f32 %v817_v61, %v319_v46  ;;  %v350_v3 = vadd.f32 %v705_v0, %v342_v63 }
 0x357   :  { %v343_v2 = vmul.f32 %v704_v60, %v335_v62 }
 0x359   :  { %v351_v4 = vadd.f32 %v705_v0, %v343_v2 }
 0x35b   :  { %v352_v5 = vpack.c.bf16 %v351_v4, %v350_v3 }
 0x35d   :  { %764 = vmatmul.mubr.msk.bf16.vlgmr.msra.gmra.mrb[0].mxu1 %vm252_vm11, %v352_v5 }
 0x35e   :  { %771 = vmatprep.mubr.msk.bf16.mxu1 %vm1056_vm7, %v1055_v1  ;;  %768 = vmatpush3.bf16.msra.mxu1 %v806_v35 }
 0x35f   :  { %769 = vmatprep.subr.bf16.mxu1 %v1055_v1 }
 0x362   :  { %770 = vmatpush3.bf16.msra.mxu1 %v807_v36 }
 0x430   :  { %v413_v7 = vpop.f32.mrb[0].mxu1 }
 0x431   :  { %v414_v8 = vadd.f32 %v706_v6, %v413_v7  ;;  %v765_v9 = vpop.f32.mrb[1].mxu1 }
 0x432   :  { %v416_v10 = vpop.f32.mrb[2].mxu1 }
 0x433   :  { %v422_v11 = vmul.f32 0.70710677, %v414_v8  ;;  %v417_v12 = vadd.f32 %v706_v6, %v416_v10  ;;  %v766_v13 = vpop.f32.mrb[3].mxu1  ;;  %v420_v16 = vmul.f32 0.5, %v414_v8 }
 0x435   :  { %818 = verf.f32 %v422_v11  ;;  %v423_v14 = vmul.f32 0.70710677, %v417_v12  ;;  %v421_v19 = vmul.f32 0.5, %v417_v12 }
 0x437   :  { %820 = verf.f32 %v423_v14 }
 0x43f   :  { %v819_v15 = vpop.eup %818 }
 0x440   :  { %v426_v17 = vadd.f32 1.0, %v819_v15 }
 0x441   :  { %v821_v18 = vpop.eup %820 }
 0x442   :  { %v428_v20 = vmul.f32 %v426_v17, %v420_v16  ;;  %v427_v21 = vadd.f32 1.0, %v821_v18 }
 0x444   :  { %v432_v22 = vsel %vm252_vm11, %v428_v20, 0.0  ;;  %v429_v23 = vmul.f32 %v427_v21, %v421_v19  ;;  %v809_v21 = vld [vmem:[%s1348_s14 + $0x8] sm:$0xff]  }
 0x445   :  { %433 = vadd.xlane.f32.xlu1 %v432_v22 }
 0x446   :  { %v435_v24 = vsel %vm252_vm11, %v429_v23, 0.0 }
 0x449   :  { %436 = vadd.xlane.f32.xlu1 %v435_v24 }
 0x4d2   :  { %v434_v25 = vpop.xlane.xlu1 %433 }
 0x4d3   :  { %v438_v26 = vmul.f32 0.03125, %v434_v25 }
 0x4d5   :  { %v440_v27 = vsub.f32 %v428_v20, %v438_v26  ;;  %v808_v20 = vld [vmem:[%s1348_s14] sm:$0xff]  }
 0x4d6   :  { %v437_v28 = vpop.xlane.xlu1 %436  ;;  %776 = vmatpush3.bf16.msra.mxu0 %v808_v20 }
 0x4d7   :  { %v439_v29 = vmul.f32 0.03125, %v437_v28  ;;  %v442_v30 = vmul.f32 %v440_v27, %v440_v27  ;;  %777 = vmatprep.subr.bf16.mxu0 %v1055_v1 }
 0x4d9   :  { %v441_v31 = vsub.f32 %v429_v23, %v439_v29  ;;  %v444_v32 = vsel %vm252_vm11, %v442_v30, 0.0  ;;  %v716_v30 = vld [vmem:[#allocation14] ss:$0 sm:$0xff] }
 0x4da   :  { %445 = vadd.xlane.f32.xlu1 %v444_v32  ;;  %778 = vmatpush3.bf16.msra.mxu0 %v809_v21 }
 0x4db   :  { %v443_v33 = vmul.f32 %v441_v31, %v441_v31 }
 0x4dd   :  { %v447_v34 = vsel %vm252_vm11, %v443_v33, 0.0 }
 0x4de   :  { %448 = vadd.xlane.f32.xlu1 %v447_v34  ;;  %v717_v34 = vld [vmem:[#allocation15] ss:$0 sm:$0xff] }
 0x567   :  { %v446_v37 = vpop.xlane.xlu1 %445 }
 0x568   :  { %v450_v38 = vmul.f32 0.03125, %v446_v37 }
 0x56a   :  { %v452_v39 = vadd.f32 1e-12, %v450_v38 }
 0x56b   :  { %v449_v40 = vpop.xlane.xlu1 %448 }
 0x56c   :  { %822 = vrsqrt.f32 %v452_v39  ;;  %v451_v41 = vmul.f32 0.03125, %v449_v40  ;;  %v718_v39 = vld [vmem:[%s1349_s15] ss:$0 sm:$0xff] }
 0x56e   :  { %v453_v42 = vadd.f32 1e-12, %v451_v41 }
 0x570   :  { %824 = vrsqrt.f32 %v453_v42 }
 0x576   :  { %v823_v43 = vpop.eup %822 }
 0x577   :  { %v456_v44 = vmul.f32 %v823_v43, %v440_v27 }
 0x579   :  { %v464_v47 = vmul.f32 %v710_v45, %v456_v44 }
 0x57a   :  { %v825_v46 = vpop.eup %824 }
 0x57b   :  { %v457_v48 = vmul.f32 %v825_v46, %v441_v31  ;;  %v472_v51 = vadd.f32 %v711_v49, %v464_v47 }
 0x57d   :  { %v465_v50 = vmul.f32 %v710_v45, %v457_v48 }
 0x57f   :  { %v473_v52 = vadd.f32 %v711_v49, %v465_v50 }
 0x581   :  { %v474_v53 = vpack.c.bf16 %v473_v52, %v472_v51 }
 0x583   :  { %772 = vmatmul.mubr.msk.bf16.vlgmr.msra.gmra.mrb[4].mxu1 %vm252_vm11, %v474_v53 }
 0x656   :  { %v535_v55 = vpop.f32.mrb[4].mxu1 }
 0x657   :  { %v536_v56 = vadd.f32 %v712_v54, %v535_v55  ;;  %v773_v57 = vpop.f32.mrb[5].mxu1 }
 0x658   :  { %v538_v58 = vpop.f32.mrb[6].mxu1 }
 0x659   :  { %v544_v59 = vmul.f32 0.70710677, %v536_v56  ;;  %v539_v60 = vadd.f32 %v712_v54, %v538_v58  ;;  %v774_v61 = vpop.f32.mrb[7].mxu1  ;;  %v542_v0 = vmul.f32 0.5, %v536_v56 }
 0x65b   :  { %826 = verf.f32 %v544_v59  ;;  %v545_v62 = vmul.f32 0.70710677, %v539_v60  ;;  %v543_v4 = vmul.f32 0.5, %v539_v60 }
 0x65d   :  { %828 = verf.f32 %v545_v62 }
 0x665   :  { %v827_v63 = vpop.eup %826 }
 0x666   :  { %v548_v2 = vadd.f32 1.0, %v827_v63 }
 0x667   :  { %v829_v3 = vpop.eup %828 }
 0x668   :  { %v550_v5 = vmul.f32 %v548_v2, %v542_v0  ;;  %v549_v6 = vadd.f32 1.0, %v829_v3 }
 0x66a   :  { %v554_v7 = vsel %vm252_vm11, %v550_v5, 0.0  ;;  %v551_v8 = vmul.f32 %v549_v6, %v543_v4 }
 0x66b   :  { %555 = vadd.xlane.f32.xlu1 %v554_v7 }
 0x66c   :  { %v557_v9 = vsel %vm252_vm11, %v551_v8, 0.0 }
 0x66f   :  { %558 = vadd.xlane.f32.xlu1 %v557_v9 }
 0x6f8   :  { %v556_v10 = vpop.xlane.xlu1 %555 }
 0x6f9   :  { %v560_v11 = vmul.f32 0.03125, %v556_v10 }
 0x6fb   :  { %v562_v12 = vsub.f32 %v550_v5, %v560_v11 }
 0x6fc   :  { %v559_v13 = vpop.xlane.xlu1 %558 }
 0x6fd   :  { %v561_v14 = vmul.f32 0.03125, %v559_v13  ;;  %v564_v15 = vmul.f32 %v562_v12, %v562_v12 }
 0x6ff   :  { %v563_v16 = vsub.f32 %v551_v8, %v561_v14  ;;  %v566_v17 = vsel %vm252_vm11, %v564_v15, 0.0 }
 0x700   :  { %567 = vadd.xlane.f32.xlu1 %v566_v17 }
 0x701   :  { %v565_v18 = vmul.f32 %v563_v16, %v563_v16 }
 0x703   :  { %v569_v19 = vsel %vm252_vm11, %v565_v18, 0.0 }
 0x704   :  { %570 = vadd.xlane.f32.xlu0 %v569_v19 }
 0x78d   :  { %v568_v22 = vpop.xlane.xlu1 %567 }
 0x78e   :  { %v572_v23 = vmul.f32 0.03125, %v568_v22 }
 0x790   :  { %v574_v24 = vadd.f32 1e-12, %v572_v23 }
 0x791   :  { %v571_v25 = vpop.xlane.xlu0 %570 }
 0x792   :  { %830 = vrsqrt.f32 %v574_v24  ;;  %v573_v26 = vmul.f32 0.03125, %v571_v25 }
 0x794   :  { %v575_v27 = vadd.f32 1e-12, %v573_v26 }
 0x796   :  { %832 = vrsqrt.f32 %v575_v27 }
 0x79c   :  { %v831_v28 = vpop.eup %830 }
 0x79d   :  { %v578_v29 = vmul.f32 %v831_v28, %v562_v12 }
 0x79f   :  { %v586_v32 = vmul.f32 %v716_v30, %v578_v29 }
 0x7a0   :  { %v833_v31 = vpop.eup %832 }
 0x7a1   :  { %v579_v33 = vmul.f32 %v833_v31, %v563_v16  ;;  %v594_v36 = vadd.f32 %v717_v34, %v586_v32 }
 0x7a3   :  { %v587_v35 = vmul.f32 %v716_v30, %v579_v33 }
 0x7a5   :  { %v595_v37 = vadd.f32 %v717_v34, %v587_v35 }
 0x7a7   :  { %v596_v1 = vpack.c.bf16 %v595_v37, %v594_v36 }
 0x7a9   :  { %597 = vst.msk [vmem:[#allocation2] sm:$0xff] %vm252_vm11, %v596_v1 }
 0x7b0   :  { %v598_v38 = vld [vmem:[#allocation2] sm:$0xff] }
 0x7b1   :  { %780 = vmatmul.mubr.msk.bf16.vlgmr.msra.gmra.mrb[4].mxu0 %vm252_vm11, %v598_v38 }
 0x884   :  { %v660_v40 = vpop.f32.mrb[4].mxu0 }
 0x885   :  { %v781_v41 = vpop.f32.mrb[5].mxu0  ;;  %v661_v43 = vadd.f32 %v718_v39, %v660_v40 }
 0x886   :  { %v663_v42 = vpop.f32.mrb[6].mxu0 }
 0x887   :  { %v664_v44 = vadd.f32 %v718_v39, %v663_v42  ;;  %v782_v45 = vpop.f32.mrb[7].mxu0 }
 0x889   :  { %v729_v46 = vpack.c.bf16 %v664_v44, %v661_v43 }
 0x88b   :  { %730 = vst [vmem:[#allocation17] sm:$0xff] %v729_v46  }
 0x88c   :  { %1021 = shalt.err (!%p1018_p12)
}
 0x88d   :  { %s1356_s28 = sld [smem:[#allocation25_spill]] }
 0x893   :  { %s1022_s24 = scalar_lea.hbm %s1356_s28, 128 }
 0x894   :  { %p1023_p13 = scmp.ne.s32.totalorder %s1356_s28, %s1022_s24  ;;  %p1026_p0 = scmp.lt.u32.totalorder %s1022_s24, %s1356_s28 }
 0x896   :  { %p1028_p1 = pnand %p1026_p0, %p1023_p13 }
 0x898   :  { %1031 = shalt.err (!%p1028_p1)
}
 0x899   :  { %688 = dma.vmem_to_hbm [thread:$0]  %s683_s22, 128, %s1356_s28, [#allocation5], %s1045_s0, %s1045_s0, %s1046_s17  }
 0x89a   :  { %1042 = dma.done.wait [#allocation5], 128  }
 0x89b   :  { %1043 = vsyncadd [#allocation5], 4294967168 }
 0x89c   :  { %692 = vsyncpa [#allocation4], 1 }
 0x89d   :  { %693 = vsyncpa [#allocation7], 1 }
 0x89e   :  { %694 = vsyncpa [#allocation10], 1 }
 0x89f   :  { %695 = vsyncpa [#allocation13], 1 }
 0x8a0   :  { %696 = vsyncpa [#allocation16], 1 }
 0x8a1   :  { %697 = vsyncpa [#allocation5], 1 }

</bundles_post_ra>
